<compile_context>
chip_gen: v5e
topology: v5e:2x2
jax: 0.10.0
libtpu: 0.0.40
codegen_flags: <defaults>
</compile_context>

<pallas_src>
import functools
import math

import jax
import jax.numpy as jnp
from jax.experimental import pallas as pl
from jax.experimental.pallas import tpu as pltpu


def _layernorm(x, gamma, beta, eps=1e-5):
    mu = jnp.mean(x, axis=-1, keepdims=True)
    var = jnp.mean((x - mu) ** 2, axis=-1, keepdims=True)
    return (x - mu) * jax.lax.rsqrt(var + eps) * gamma + beta


def encoder_layer_kernel(
    x_ref,                      # (B*T, D)
    g1_ref, be1_ref,            # (1, D)      norm1
    wqkv_ref, bqkv_ref,         # (D, 3D), (1, 3D)  head-grouped [q_h | k_h | v_h]
    wo_ref, bo_ref,             # (D, D), (1, D)
    g2_ref, be2_ref,            # (1, D)      norm2
    w1_ref, bb1_ref,            # (D, FF), (1, FF)
    w2_ref, bb2_ref,            # (FF, D), (1, D)
    o_ref,                      # (B*T, D)
    qkv_scr,                    # VMEM (B*H, T, 3*hd) scratch (head-major qkv)
    att_scr,                    # VMEM (B*T, D) scratch (attention context)
    *, batch, seq, n_heads, head_dim,
):
    x = x_ref[...]                                              # (B*T, D), f32

    # ---------------- attention branch: attn(norm1(x)) ----------------
    xn = _layernorm(x, g1_ref[...], be1_ref[...])

    # Fused QKV projection: one (B*T, D) x (D, 3D) MXU contraction.
    qkv = jnp.dot(xn, wqkv_ref[...],
                  preferred_element_type=jnp.float32) + bqkv_ref[...]

    # Scatter per-(batch, head) chunks into a head-major scratch so the
    # attention matmuls can run as a single batched contraction over
    # g = batch*heads.  Static Python loops (batch, n_heads are small ints).
    for b in range(batch):
        for h in range(n_heads):
            g = b * n_heads + h
            qkv_scr[g] = qkv[b * seq:(b + 1) * seq,
                             h * 3 * head_dim:(h + 1) * 3 * head_dim]

    qkvh = qkv_scr[...]                                         # (G, T, 3*hd)
    scale = 1.0 / math.sqrt(head_dim)
    qh = qkvh[:, :, :head_dim] * scale                          # scale folded into q
    kh = qkvh[:, :, head_dim:2 * head_dim]
    vh = qkvh[:, :, 2 * head_dim:]

    # Batched attention (one MXU issue per stage for all batch*head pairs).
    s = jnp.einsum('gtd,gsd->gts', qh, kh,
                   preferred_element_type=jnp.float32)          # (G, T, T)
    m = jnp.max(s, axis=-1, keepdims=True)
    p = jnp.exp(s - m)
    p = p * pl.reciprocal(jnp.sum(p, axis=-1, keepdims=True), approx=True)
    ctx = jnp.einsum('gts,gsd->gtd', p, vh,
                     preferred_element_type=jnp.float32)        # (G, T, hd)

    # Scatter heads back into a (B*T, D) layout for the output projection.
    for b in range(batch):
        for h in range(n_heads):
            g = b * n_heads + h
            att_scr[b * seq:(b + 1) * seq,
                    h * head_dim:(h + 1) * head_dim] = ctx[g]

    att = jnp.dot(att_scr[...], wo_ref[...],
                  preferred_element_type=jnp.float32) + bo_ref[...]
    x1 = x + att                                                # residual

    # ---------------- feed-forward branch: ff(norm2(x1)) ----------------
    xn2 = _layernorm(x1, g2_ref[...], be2_ref[...])
    hid = jnp.dot(xn2, w1_ref[...],
                  preferred_element_type=jnp.float32) + bb1_ref[...]
    hid = jnp.maximum(hid, 0.0)
    y = jnp.dot(hid, w2_ref[...],
                preferred_element_type=jnp.float32) + bb2_ref[...]

    o_ref[...] = (x1 + y).astype(o_ref.dtype)


def transformer_encoder_layer(x, params, *, n_heads):
    B, T, D = x.shape
    FF = params["w1"].shape[1]
    hd = D // n_heads

    # Pack Q/K/V weights head-grouped: for head h the columns are
    # [ Wq[:, h*hd:(h+1)*hd] | Wk[:, ...] | Wv[:, ...] ]  (width 3*hd per head).
    wq = params["wq"].reshape(D, n_heads, hd)
    wk = params["wk"].reshape(D, n_heads, hd)
    wv = params["wv"].reshape(D, n_heads, hd)
    wqkv = jnp.concatenate([wq, wk, wv], axis=2).reshape(D, 3 * D)
    bq = params["bq"].reshape(1, n_heads, hd)
    bk = params["bk"].reshape(1, n_heads, hd)
    bv = params["bv"].reshape(1, n_heads, hd)
    bqkv = jnp.concatenate([bq, bk, bv], axis=2).reshape(1, 3 * D)

    x2d = x.reshape(B * T, D)

    kernel = functools.partial(
        encoder_layer_kernel, batch=B, seq=T, n_heads=n_heads, head_dim=hd)

    vspec = pl.BlockSpec(memory_space=pltpu.MemorySpace.VMEM)  # whole array in VMEM
    n_inputs = 13

    out2d = pl.pallas_call(
        kernel,
        out_shape=jax.ShapeDtypeStruct((B * T, D), x.dtype),
        in_specs=[vspec] * n_inputs,
        out_specs=vspec,
        scratch_shapes=[
            pltpu.VMEM((B * n_heads, T, 3 * hd), jnp.float32),  # head-major qkv
            pltpu.VMEM((B * T, D), jnp.float32),                # attention context
        ],
        compiler_params=pltpu.CompilerParams(
            vmem_limit_bytes=32 * 1024 * 1024,
        ),
    )(
        x2d,
        params["g1"], params["be1"],
        wqkv, bqkv,
        params["wo"], params["bo"],
        params["g2"], params["be2"],
        params["w1"], params["bb1"],
        params["w2"], params["bb2"],
    )
    return out2d.reshape(B, T, D)


def reference_encoder_layer(x, params, *, n_heads):
    """Pure-JAX reference mirroring the PyTorch forward (eval mode, no mask)."""
    B, T, D = x.shape
    hd = D // n_heads

    def ln(v, g, b, eps=1e-5):
        mu = jnp.mean(v, axis=-1, keepdims=True)
        var = jnp.mean((v - mu) ** 2, axis=-1, keepdims=True)
        return (v - mu) / jnp.sqrt(var + eps) * g + b

    xn = ln(x, params["g1"], params["be1"])
    q = xn @ params["wq"] + params["bq"]
    k = xn @ params["wk"] + params["bk"]
    v = xn @ params["wv"] + params["bv"]
    q = q.reshape(B, T, n_heads, hd).transpose(0, 2, 1, 3)
    k = k.reshape(B, T, n_heads, hd).transpose(0, 2, 1, 3)
    v = v.reshape(B, T, n_heads, hd).transpose(0, 2, 1, 3)
    s = jnp.einsum("bhtd,bhsd->bhts", q, k) / math.sqrt(hd)
    p = jax.nn.softmax(s, axis=-1)
    att = jnp.einsum("bhts,bhsd->bhtd", p, v)
    att = att.transpose(0, 2, 1, 3).reshape(B, T, D)
    att = att @ params["wo"] + params["bo"]
    x1 = x + att
    xn2 = ln(x1, params["g2"], params["be2"])
    hid = jnp.maximum(xn2 @ params["w1"] + params["bb1"], 0.0)
    y = hid @ params["w2"] + params["bb2"]
    return x1 + y


def make_params(key, dim, ff_dim):
    ks = jax.random.split(key, 8)
    s = 0.05
    return {
        "g1": jnp.ones((1, dim), jnp.float32),
        "be1": jnp.zeros((1, dim), jnp.float32),
        "wq": jax.random.normal(ks[0], (dim, dim), jnp.float32) * s,
        "bq": jax.random.normal(ks[1], (1, dim), jnp.float32) * s,
        "wk": jax.random.normal(ks[2], (dim, dim), jnp.float32) * s,
        "bk": jax.random.normal(ks[3], (1, dim), jnp.float32) * s,
        "wv": jax.random.normal(ks[4], (dim, dim), jnp.float32) * s,
        "bv": jax.random.normal(ks[5], (1, dim), jnp.float32) * s,
        "wo": jax.random.normal(ks[6], (dim, dim), jnp.float32) * s,
        "bo": jnp.zeros((1, dim), jnp.float32),
        "g2": jnp.ones((1, dim), jnp.float32),
        "be2": jnp.zeros((1, dim), jnp.float32),
        "w1": jax.random.normal(ks[7], (dim, ff_dim), jnp.float32) * s,
        "bb1": jnp.zeros((1, ff_dim), jnp.float32),
        "w2": jax.random.normal(jax.random.fold_in(key, 99), (ff_dim, dim),
                                jnp.float32) * s,
        "bb2": jnp.zeros((1, dim), jnp.float32),
    }


if __name__ == "__main__":
    # Small shapes consistent with the module: B=2, T=8, dim=32, ff_dim=64, n_heads=8
    B, T, D, FF, H = 2, 8, 32, 64, 8
    key = jax.random.PRNGKey(0)
    kx, kp = jax.random.split(key)
    x = jax.random.normal(kx, (B, T, D), jnp.float32)
    params = make_params(kp, D, FF)

    out = transformer_encoder_layer(x, params, n_heads=H)
    out = jax.block_until_ready(out)

    ref = reference_encoder_layer(x, params, n_heads=H)
    assert out.shape == (B, T, D)
    max_err = float(jnp.max(jnp.abs(out - ref)))
    # tolerance slightly relaxed vs exact math because the softmax denominator
    # uses the EUP approximate reciprocal (pl.reciprocal(approx=True)).
    assert jnp.allclose(out, ref, atol=2e-3, rtol=2e-3), f"mismatch vs reference: {max_err}"

    print("KERNEL_OK")
</pallas_src>

<mosaic_0001>
module attributes {stable_mosaic.version = 11 : i64} {
  func.func @encoder_layer_kernel(%arg0: memref<16x32xf32, #tpu.memory_space<vmem>>, %arg1: memref<1x32xf32, #tpu.memory_space<vmem>>, %arg2: memref<1x32xf32, #tpu.memory_space<vmem>>, %arg3: memref<32x96xf32, #tpu.memory_space<vmem>>, %arg4: memref<1x96xf32, #tpu.memory_space<vmem>>, %arg5: memref<32x32xf32, #tpu.memory_space<vmem>>, %arg6: memref<1x32xf32, #tpu.memory_space<vmem>>, %arg7: memref<1x32xf32, #tpu.memory_space<vmem>>, %arg8: memref<1x32xf32, #tpu.memory_space<vmem>>, %arg9: memref<32x64xf32, #tpu.memory_space<vmem>>, %arg10: memref<1x64xf32, #tpu.memory_space<vmem>>, %arg11: memref<64x32xf32, #tpu.memory_space<vmem>>, %arg12: memref<1x32xf32, #tpu.memory_space<vmem>>, %arg13: memref<16x32xf32, #tpu.memory_space<vmem>>, %arg14: memref<16x8x12xf32, #tpu.memory_space<vmem>>, %arg15: memref<16x32xf32, #tpu.memory_space<vmem>>) attributes {dimension_semantics = [], scalar_prefetch = 0 : i64, scratch_operands = 2 : i64, tpu.core_type = #tpu.core_type<tc>} {
    %c0 = arith.constant 0 : index
    %c0_0 = arith.constant 0 : index
    %0 = vector.load %arg0[%c0, %c0_0] : memref<16x32xf32, #tpu.memory_space<vmem>>, vector<16x32xf32>
    %c0_1 = arith.constant 0 : index
    %c0_2 = arith.constant 0 : index
    %1 = vector.load %arg1[%c0_1, %c0_2] : memref<1x32xf32, #tpu.memory_space<vmem>>, vector<1x32xf32>
    %c0_3 = arith.constant 0 : index
    %c0_4 = arith.constant 0 : index
    %2 = vector.load %arg2[%c0_3, %c0_4] : memref<1x32xf32, #tpu.memory_space<vmem>>, vector<1x32xf32>
    %cst = arith.constant dense<0.000000e+00> : vector<16xf32>
    %3 = vector.multi_reduction <add>, %0, %cst [1] : vector<16x32xf32> to vector<16xf32>
    %4 = vector.shape_cast %3 : vector<16xf32> to vector<16x1xf32>
    %cst_5 = arith.constant 3.200000e+01 : f32
    %5 = vector.broadcast %cst_5 : f32 to vector<16x1xf32>
    %6 = arith.divf %4, %5 : vector<16x1xf32>
    %7 = vector.broadcast %6 : vector<16x1xf32> to vector<16x32xf32>
    %8 = arith.subf %0, %7 : vector<16x32xf32>
    %9 = arith.mulf %8, %8 : vector<16x32xf32>
    %cst_6 = arith.constant dense<0.000000e+00> : vector<16xf32>
    %10 = vector.multi_reduction <add>, %9, %cst_6 [1] : vector<16x32xf32> to vector<16xf32>
    %11 = vector.shape_cast %10 : vector<16xf32> to vector<16x1xf32>
    %cst_7 = arith.constant 3.200000e+01 : f32
    %12 = vector.broadcast %cst_7 : f32 to vector<16x1xf32>
    %13 = arith.divf %11, %12 : vector<16x1xf32>
    %14 = vector.broadcast %6 : vector<16x1xf32> to vector<16x32xf32>
    %15 = arith.subf %0, %14 : vector<16x32xf32>
    %cst_8 = arith.constant 9.99999974E-6 : f32
    %16 = vector.broadcast %cst_8 : f32 to vector<16x1xf32>
    %17 = arith.addf %13, %16 : vector<16x1xf32>
    %18 = math.rsqrt %17 : vector<16x1xf32>
    %19 = vector.broadcast %18 : vector<16x1xf32> to vector<16x32xf32>
    %20 = arith.mulf %15, %19 : vector<16x32xf32>
    %21 = vector.broadcast %1 : vector<1x32xf32> to vector<16x32xf32>
    %22 = arith.mulf %20, %21 : vector<16x32xf32>
    %23 = vector.broadcast %2 : vector<1x32xf32> to vector<16x32xf32>
    %24 = arith.addf %22, %23 : vector<16x32xf32>
    %c0_9 = arith.constant 0 : index
    %c0_10 = arith.constant 0 : index
    %25 = vector.load %arg3[%c0_9, %c0_10] : memref<32x96xf32, #tpu.memory_space<vmem>>, vector<32x96xf32>
    %cst_11 = arith.constant dense<0.000000e+00> : vector<16x96xf32>
    %26 = tpu.matmul %24, %25, %cst_11 {dimension_numbers = #tpu.dot_dimension_numbers<[1], [0], [0], [1], [0, 0, 1, 1], [], []>} : vector<16x32xf32>, vector<32x96xf32>, vector<16x96xf32> -> vector<16x96xf32>
    %c0_12 = arith.constant 0 : index
    %c0_13 = arith.constant 0 : index
    %27 = vector.load %arg4[%c0_12, %c0_13] : memref<1x96xf32, #tpu.memory_space<vmem>>, vector<1x96xf32>
    %28 = vector.broadcast %27 : vector<1x96xf32> to vector<16x96xf32>
    %29 = arith.addf %26, %28 : vector<16x96xf32>
    %30 = vector.extract_strided_slice %29 {offsets = [0, 0], sizes = [8, 12], strides = [1, 1]} : vector<16x96xf32> to vector<8x12xf32>
    %c0_14 = arith.constant 0 : index
    %c0_15 = arith.constant 0 : index
    %c0_16 = arith.constant 0 : index
    %31 = vector.load %arg14[%c0_14, %c0_15, %c0_16] : memref<16x8x12xf32, #tpu.memory_space<vmem>>, vector<1x8x12xf32>
    %32 = vector.shape_cast %31 : vector<1x8x12xf32> to vector<8x12xf32>
    %33 = vector.shape_cast %30 : vector<8x12xf32> to vector<1x8x12xf32>
    tpu.vector_store %arg14[%c0_14, %c0_15, %c0_16], %33 {strides = array<i32>} : memref<16x8x12xf32, #tpu.memory_space<vmem>>, vector<1x8x12xf32>,
    %34 = vector.extract_strided_slice %29 {offsets = [0, 12], sizes = [8, 12], strides = [1, 1]} : vector<16x96xf32> to vector<8x12xf32>
    %c1 = arith.constant 1 : index
    %c0_17 = arith.constant 0 : index
    %c0_18 = arith.constant 0 : index
    %35 = vector.load %arg14[%c1, %c0_17, %c0_18] : memref<16x8x12xf32, #tpu.memory_space<vmem>>, vector<1x8x12xf32>
    %36 = vector.shape_cast %35 : vector<1x8x12xf32> to vector<8x12xf32>
    %37 = vector.shape_cast %34 : vector<8x12xf32> to vector<1x8x12xf32>
    tpu.vector_store %arg14[%c1, %c0_17, %c0_18], %37 {strides = array<i32>} : memref<16x8x12xf32, #tpu.memory_space<vmem>>, vector<1x8x12xf32>,
    %38 = vector.extract_strided_slice %29 {offsets = [0, 24], sizes = [8, 12], strides = [1, 1]} : vector<16x96xf32> to vector<8x12xf32>
    %c2 = arith.constant 2 : index
    %c0_19 = arith.constant 0 : index
    %c0_20 = arith.constant 0 : index
    %39 = vector.load %arg14[%c2, %c0_19, %c0_20] : memref<16x8x12xf32, #tpu.memory_space<vmem>>, vector<1x8x12xf32>
    %40 = vector.shape_cast %39 : vector<1x8x12xf32> to vector<8x12xf32>
    %41 = vector.shape_cast %38 : vector<8x12xf32> to vector<1x8x12xf32>
    tpu.vector_store %arg14[%c2, %c0_19, %c0_20], %41 {strides = array<i32>} : memref<16x8x12xf32, #tpu.memory_space<vmem>>, vector<1x8x12xf32>,
    %42 = vector.extract_strided_slice %29 {offsets = [0, 36], sizes = [8, 12], strides = [1, 1]} : vector<16x96xf32> to vector<8x12xf32>
    %c3 = arith.constant 3 : index
    %c0_21 = arith.constant 0 : index
    %c0_22 = arith.constant 0 : index
    %43 = vector.load %arg14[%c3, %c0_21, %c0_22] : memref<16x8x12xf32, #tpu.memory_space<vmem>>, vector<1x8x12xf32>
    %44 = vector.shape_cast %43 : vector<1x8x12xf32> to vector<8x12xf32>
    %45 = vector.shape_cast %42 : vector<8x12xf32> to vector<1x8x12xf32>
    tpu.vector_store %arg14[%c3, %c0_21, %c0_22], %45 {strides = array<i32>} : memref<16x8x12xf32, #tpu.memory_space<vmem>>, vector<1x8x12xf32>,
    %46 = vector.extract_strided_slice %29 {offsets = [0, 48], sizes = [8, 12], strides = [1, 1]} : vector<16x96xf32> to vector<8x12xf32>
    %c4 = arith.constant 4 : index
    %c0_23 = arith.constant 0 : index
    %c0_24 = arith.constant 0 : index
    %47 = vector.load %arg14[%c4, %c0_23, %c0_24] : memref<16x8x12xf32, #tpu.memory_space<vmem>>, vector<1x8x12xf32>
    %48 = vector.shape_cast %47 : vector<1x8x12xf32> to vector<8x12xf32>
    %49 = vector.shape_cast %46 : vector<8x12xf32> to vector<1x8x12xf32>
    tpu.vector_store %arg14[%c4, %c0_23, %c0_24], %49 {strides = array<i32>} : memref<16x8x12xf32, #tpu.memory_space<vmem>>, vector<1x8x12xf32>,
    %50 = vector.extract_strided_slice %29 {offsets = [0, 60], sizes = [8, 12], strides = [1, 1]} : vector<16x96xf32> to vector<8x12xf32>
    %c5 = arith.constant 5 : index
    %c0_25 = arith.constant 0 : index
    %c0_26 = arith.constant 0 : index
    %51 = vector.load %arg14[%c5, %c0_25, %c0_26] : memref<16x8x12xf32, #tpu.memory_space<vmem>>, vector<1x8x12xf32>
    %52 = vector.shape_cast %51 : vector<1x8x12xf32> to vector<8x12xf32>
    %53 = vector.shape_cast %50 : vector<8x12xf32> to vector<1x8x12xf32>
    tpu.vector_store %arg14[%c5, %c0_25, %c0_26], %53 {strides = array<i32>} : memref<16x8x12xf32, #tpu.memory_space<vmem>>, vector<1x8x12xf32>,
    %54 = vector.extract_strided_slice %29 {offsets = [0, 72], sizes = [8, 12], strides = [1, 1]} : vector<16x96xf32> to vector<8x12xf32>
    %c6 = arith.constant 6 : index
    %c0_27 = arith.constant 0 : index
    %c0_28 = arith.constant 0 : index
    %55 = vector.load %arg14[%c6, %c0_27, %c0_28] : memref<16x8x12xf32, #tpu.memory_space<vmem>>, vector<1x8x12xf32>
    %56 = vector.shape_cast %55 : vector<1x8x12xf32> to vector<8x12xf32>
    %57 = vector.shape_cast %54 : vector<8x12xf32> to vector<1x8x12xf32>
    tpu.vector_store %arg14[%c6, %c0_27, %c0_28], %57 {strides = array<i32>} : memref<16x8x12xf32, #tpu.memory_space<vmem>>, vector<1x8x12xf32>,
    %58 = vector.extract_strided_slice %29 {offsets = [0, 84], sizes = [8, 12], strides = [1, 1]} : vector<16x96xf32> to vector<8x12xf32>
    %c7 = arith.constant 7 : index
    %c0_29 = arith.constant 0 : index
    %c0_30 = arith.constant 0 : index
    %59 = vector.load %arg14[%c7, %c0_29, %c0_30] : memref<16x8x12xf32, #tpu.memory_space<vmem>>, vector<1x8x12xf32>
    %60 = vector.shape_cast %59 : vector<1x8x12xf32> to vector<8x12xf32>
    %61 = vector.shape_cast %58 : vector<8x12xf32> to vector<1x8x12xf32>
    tpu.vector_store %arg14[%c7, %c0_29, %c0_30], %61 {strides = array<i32>} : memref<16x8x12xf32, #tpu.memory_space<vmem>>, vector<1x8x12xf32>,
    %62 = vector.extract_strided_slice %29 {offsets = [8, 0], sizes = [8, 12], strides = [1, 1]} : vector<16x96xf32> to vector<8x12xf32>
    %c8 = arith.constant 8 : index
    %c0_31 = arith.constant 0 : index
    %c0_32 = arith.constant 0 : index
    %63 = vector.load %arg14[%c8, %c0_31, %c0_32] : memref<16x8x12xf32, #tpu.memory_space<vmem>>, vector<1x8x12xf32>
    %64 = vector.shape_cast %63 : vector<1x8x12xf32> to vector<8x12xf32>
    %65 = vector.shape_cast %62 : vector<8x12xf32> to vector<1x8x12xf32>
    tpu.vector_store %arg14[%c8, %c0_31, %c0_32], %65 {strides = array<i32>} : memref<16x8x12xf32, #tpu.memory_space<vmem>>, vector<1x8x12xf32>,
    %66 = vector.extract_strided_slice %29 {offsets = [8, 12], sizes = [8, 12], strides = [1, 1]} : vector<16x96xf32> to vector<8x12xf32>
    %c9 = arith.constant 9 : index
    %c0_33 = arith.constant 0 : index
    %c0_34 = arith.constant 0 : index
    %67 = vector.load %arg14[%c9, %c0_33, %c0_34] : memref<16x8x12xf32, #tpu.memory_space<vmem>>, vector<1x8x12xf32>
    %68 = vector.shape_cast %67 : vector<1x8x12xf32> to vector<8x12xf32>
    %69 = vector.shape_cast %66 : vector<8x12xf32> to vector<1x8x12xf32>
    tpu.vector_store %arg14[%c9, %c0_33, %c0_34], %69 {strides = array<i32>} : memref<16x8x12xf32, #tpu.memory_space<vmem>>, vector<1x8x12xf32>,
    %70 = vector.extract_strided_slice %29 {offsets = [8, 24], sizes = [8, 12], strides = [1, 1]} : vector<16x96xf32> to vector<8x12xf32>
    %c10 = arith.constant 10 : index
    %c0_35 = arith.constant 0 : index
    %c0_36 = arith.constant 0 : index
    %71 = vector.load %arg14[%c10, %c0_35, %c0_36] : memref<16x8x12xf32, #tpu.memory_space<vmem>>, vector<1x8x12xf32>
    %72 = vector.shape_cast %71 : vector<1x8x12xf32> to vector<8x12xf32>
    %73 = vector.shape_cast %70 : vector<8x12xf32> to vector<1x8x12xf32>
    tpu.vector_store %arg14[%c10, %c0_35, %c0_36], %73 {strides = array<i32>} : memref<16x8x12xf32, #tpu.memory_space<vmem>>, vector<1x8x12xf32>,
    %74 = vector.extract_strided_slice %29 {offsets = [8, 36], sizes = [8, 12], strides = [1, 1]} : vector<16x96xf32> to vector<8x12xf32>
    %c11 = arith.constant 11 : index
    %c0_37 = arith.constant 0 : index
    %c0_38 = arith.constant 0 : index
    %75 = vector.load %arg14[%c11, %c0_37, %c0_38] : memref<16x8x12xf32, #tpu.memory_space<vmem>>, vector<1x8x12xf32>
    %76 = vector.shape_cast %75 : vector<1x8x12xf32> to vector<8x12xf32>
    %77 = vector.shape_cast %74 : vector<8x12xf32> to vector<1x8x12xf32>
    tpu.vector_store %arg14[%c11, %c0_37, %c0_38], %77 {strides = array<i32>} : memref<16x8x12xf32, #tpu.memory_space<vmem>>, vector<1x8x12xf32>,
    %78 = vector.extract_strided_slice %29 {offsets = [8, 48], sizes = [8, 12], strides = [1, 1]} : vector<16x96xf32> to vector<8x12xf32>
    %c12 = arith.constant 12 : index
    %c0_39 = arith.constant 0 : index
    %c0_40 = arith.constant 0 : index
    %79 = vector.load %arg14[%c12, %c0_39, %c0_40] : memref<16x8x12xf32, #tpu.memory_space<vmem>>, vector<1x8x12xf32>
    %80 = vector.shape_cast %79 : vector<1x8x12xf32> to vector<8x12xf32>
    %81 = vector.shape_cast %78 : vector<8x12xf32> to vector<1x8x12xf32>
    tpu.vector_store %arg14[%c12, %c0_39, %c0_40], %81 {strides = array<i32>} : memref<16x8x12xf32, #tpu.memory_space<vmem>>, vector<1x8x12xf32>,
    %82 = vector.extract_strided_slice %29 {offsets = [8, 60], sizes = [8, 12], strides = [1, 1]} : vector<16x96xf32> to vector<8x12xf32>
    %c13 = arith.constant 13 : index
    %c0_41 = arith.constant 0 : index
    %c0_42 = arith.constant 0 : index
    %83 = vector.load %arg14[%c13, %c0_41, %c0_42] : memref<16x8x12xf32, #tpu.memory_space<vmem>>, vector<1x8x12xf32>
    %84 = vector.shape_cast %83 : vector<1x8x12xf32> to vector<8x12xf32>
    %85 = vector.shape_cast %82 : vector<8x12xf32> to vector<1x8x12xf32>
    tpu.vector_store %arg14[%c13, %c0_41, %c0_42], %85 {strides = array<i32>} : memref<16x8x12xf32, #tpu.memory_space<vmem>>, vector<1x8x12xf32>,
    %86 = vector.extract_strided_slice %29 {offsets = [8, 72], sizes = [8, 12], strides = [1, 1]} : vector<16x96xf32> to vector<8x12xf32>
    %c14 = arith.constant 14 : index
    %c0_43 = arith.constant 0 : index
    %c0_44 = arith.constant 0 : index
    %87 = vector.load %arg14[%c14, %c0_43, %c0_44] : memref<16x8x12xf32, #tpu.memory_space<vmem>>, vector<1x8x12xf32>
    %88 = vector.shape_cast %87 : vector<1x8x12xf32> to vector<8x12xf32>
    %89 = vector.shape_cast %86 : vector<8x12xf32> to vector<1x8x12xf32>
    tpu.vector_store %arg14[%c14, %c0_43, %c0_44], %89 {strides = array<i32>} : memref<16x8x12xf32, #tpu.memory_space<vmem>>, vector<1x8x12xf32>,
    %90 = vector.extract_strided_slice %29 {offsets = [8, 84], sizes = [8, 12], strides = [1, 1]} : vector<16x96xf32> to vector<8x12xf32>
    %c15 = arith.constant 15 : index
    %c0_45 = arith.constant 0 : index
    %c0_46 = arith.constant 0 : index
    %91 = vector.load %arg14[%c15, %c0_45, %c0_46] : memref<16x8x12xf32, #tpu.memory_space<vmem>>, vector<1x8x12xf32>
    %92 = vector.shape_cast %91 : vector<1x8x12xf32> to vector<8x12xf32>
    %93 = vector.shape_cast %90 : vector<8x12xf32> to vector<1x8x12xf32>
    tpu.vector_store %arg14[%c15, %c0_45, %c0_46], %93 {strides = array<i32>} : memref<16x8x12xf32, #tpu.memory_space<vmem>>, vector<1x8x12xf32>,
    %c0_47 = arith.constant 0 : index
    %c0_48 = arith.constant 0 : index
    %c0_49 = arith.constant 0 : index
    %94 = vector.load %arg14[%c0_47, %c0_48, %c0_49] : memref<16x8x12xf32, #tpu.memory_space<vmem>>, vector<16x8x12xf32>
    %95 = vector.extract_strided_slice %94 {offsets = [0, 0, 0], sizes = [16, 8, 4], strides = [1, 1, 1]} : vector<16x8x12xf32> to vector<16x8x4xf32>
    %cst_50 = arith.constant 5.000000e-01 : f32
    %96 = vector.broadcast %cst_50 : f32 to vector<16x8x4xf32>
    %97 = arith.mulf %95, %96 : vector<16x8x4xf32>
    %98 = vector.extract_strided_slice %94 {offsets = [0, 0, 4], sizes = [16, 8, 4], strides = [1, 1, 1]} : vector<16x8x12xf32> to vector<16x8x4xf32>
    %99 = vector.extract_strided_slice %94 {offsets = [0, 0, 8], sizes = [16, 8, 4], strides = [1, 1, 1]} : vector<16x8x12xf32> to vector<16x8x4xf32>
    "tpu.trace_start"() <{level = 10 : i32, message = "gtd,gsd->gts"}> : () -> ()
    %cst_51 = arith.constant dense<0.000000e+00> : vector<16x8x8xf32>
    %100 = tpu.matmul %97, %98, %cst_51 {dimension_numbers = #tpu.dot_dimension_numbers<[2], [2], [1], [1], [0, 0, 0, 1, 1, 1], [0], [0]>} : vector<16x8x4xf32>, vector<16x8x4xf32>, vector<16x8x8xf32> -> vector<16x8x8xf32>
    "tpu.trace_stop"() : () -> ()
    %cst_52 = arith.constant dense<0xFF800000> : vector<16x8xf32>
    %101 = vector.multi_reduction <maximumf>, %100, %cst_52 [2] : vector<16x8x8xf32> to vector<16x8xf32>
    %102 = vector.shape_cast %101 : vector<16x8xf32> to vector<16x8x1xf32>
    %103 = vector.broadcast %102 : vector<16x8x1xf32> to vector<16x8x8xf32>
    %104 = arith.subf %100, %103 : vector<16x8x8xf32>
    %105 = math.exp %104 : vector<16x8x8xf32>
    %cst_53 = arith.constant dense<0.000000e+00> : vector<16x8xf32>
    %106 = vector.multi_reduction <add>, %105, %cst_53 [2] : vector<16x8x8xf32> to vector<16x8xf32>
    %107 = vector.shape_cast %106 : vector<16x8xf32> to vector<16x8x1xf32>
    %108 = tpu.reciprocal %107 {approx = true} : vector<16x8x1xf32> -> vector<16x8x1xf32>
    %109 = vector.broadcast %108 : vector<16x8x1xf32> to vector<16x8x8xf32>
    %110 = arith.mulf %105, %109 : vector<16x8x8xf32>
    "tpu.trace_start"() <{level = 10 : i32, message = "gts,gsd->gtd"}> : () -> ()
    %cst_54 = arith.constant dense<0.000000e+00> : vector<16x8x4xf32>
    %111 = tpu.matmul %110, %99, %cst_54 {dimension_numbers = #tpu.dot_dimension_numbers<[2], [1], [1], [2], [0, 0, 0, 1, 1, 2], [0], [0]>} : vector<16x8x8xf32>, vector<16x8x4xf32>, vector<16x8x4xf32> -> vector<16x8x4xf32>
    "tpu.trace_stop"() : () -> ()
    %112 = vector.extract_strided_slice %111 {offsets = [0, 0, 0], sizes = [1, 8, 4], strides = [1, 1, 1]} : vector<16x8x4xf32> to vector<1x8x4xf32>
    %113 = vector.shape_cast %112 : vector<1x8x4xf32> to vector<8x4xf32>
    %c0_55 = arith.constant 0 : index
    %c0_56 = arith.constant 0 : index
    %114 = vector.load %arg15[%c0_55, %c0_56] : memref<16x32xf32, #tpu.memory_space<vmem>>, vector<8x4xf32>
    tpu.vector_store %arg15[%c0_55, %c0_56], %113 {strides = array<i32>} : memref<16x32xf32, #tpu.memory_space<vmem>>, vector<8x4xf32>,
    %115 = vector.extract_strided_slice %111 {offsets = [1, 0, 0], sizes = [1, 8, 4], strides = [1, 1, 1]} : vector<16x8x4xf32> to vector<1x8x4xf32>
    %116 = vector.shape_cast %115 : vector<1x8x4xf32> to vector<8x4xf32>
    %c0_57 = arith.constant 0 : index
    %c4_58 = arith.constant 4 : index
    %117 = vector.load %arg15[%c0_57, %c4_58] : memref<16x32xf32, #tpu.memory_space<vmem>>, vector<8x4xf32>
    tpu.vector_store %arg15[%c0_57, %c4_58], %116 {strides = array<i32>} : memref<16x32xf32, #tpu.memory_space<vmem>>, vector<8x4xf32>,
    %118 = vector.extract_strided_slice %111 {offsets = [2, 0, 0], sizes = [1, 8, 4], strides = [1, 1, 1]} : vector<16x8x4xf32> to vector<1x8x4xf32>
    %119 = vector.shape_cast %118 : vector<1x8x4xf32> to vector<8x4xf32>
    %c0_59 = arith.constant 0 : index
    %c8_60 = arith.constant 8 : index
    %120 = vector.load %arg15[%c0_59, %c8_60] : memref<16x32xf32, #tpu.memory_space<vmem>>, vector<8x4xf32>
    tpu.vector_store %arg15[%c0_59, %c8_60], %119 {strides = array<i32>} : memref<16x32xf32, #tpu.memory_space<vmem>>, vector<8x4xf32>,
    %121 = vector.extract_strided_slice %111 {offsets = [3, 0, 0], sizes = [1, 8, 4], strides = [1, 1, 1]} : vector<16x8x4xf32> to vector<1x8x4xf32>
    %122 = vector.shape_cast %121 : vector<1x8x4xf32> to vector<8x4xf32>
    %c0_61 = arith.constant 0 : index
    %c12_62 = arith.constant 12 : index
    %123 = vector.load %arg15[%c0_61, %c12_62] : memref<16x32xf32, #tpu.memory_space<vmem>>, vector<8x4xf32>
    tpu.vector_store %arg15[%c0_61, %c12_62], %122 {strides = array<i32>} : memref<16x32xf32, #tpu.memory_space<vmem>>, vector<8x4xf32>,
    %124 = vector.extract_strided_slice %111 {offsets = [4, 0, 0], sizes = [1, 8, 4], strides = [1, 1, 1]} : vector<16x8x4xf32> to vector<1x8x4xf32>
    %125 = vector.shape_cast %124 : vector<1x8x4xf32> to vector<8x4xf32>
    %c0_63 = arith.constant 0 : index
    %c16 = arith.constant 16 : index
    %126 = vector.load %arg15[%c0_63, %c16] : memref<16x32xf32, #tpu.memory_space<vmem>>, vector<8x4xf32>
    tpu.vector_store %arg15[%c0_63, %c16], %125 {strides = array<i32>} : memref<16x32xf32, #tpu.memory_space<vmem>>, vector<8x4xf32>,
    %127 = vector.extract_strided_slice %111 {offsets = [5, 0, 0], sizes = [1, 8, 4], strides = [1, 1, 1]} : vector<16x8x4xf32> to vector<1x8x4xf32>
    %128 = vector.shape_cast %127 : vector<1x8x4xf32> to vector<8x4xf32>
    %c0_64 = arith.constant 0 : index
    %c20 = arith.constant 20 : index
    %129 = vector.load %arg15[%c0_64, %c20] : memref<16x32xf32, #tpu.memory_space<vmem>>, vector<8x4xf32>
    tpu.vector_store %arg15[%c0_64, %c20], %128 {strides = array<i32>} : memref<16x32xf32, #tpu.memory_space<vmem>>, vector<8x4xf32>,
    %130 = vector.extract_strided_slice %111 {offsets = [6, 0, 0], sizes = [1, 8, 4], strides = [1, 1, 1]} : vector<16x8x4xf32> to vector<1x8x4xf32>
    %131 = vector.shape_cast %130 : vector<1x8x4xf32> to vector<8x4xf32>
    %c0_65 = arith.constant 0 : index
    %c24 = arith.constant 24 : index
    %132 = vector.load %arg15[%c0_65, %c24] : memref<16x32xf32, #tpu.memory_space<vmem>>, vector<8x4xf32>
    tpu.vector_store %arg15[%c0_65, %c24], %131 {strides = array<i32>} : memref<16x32xf32, #tpu.memory_space<vmem>>, vector<8x4xf32>,
    %133 = vector.extract_strided_slice %111 {offsets = [7, 0, 0], sizes = [1, 8, 4], strides = [1, 1, 1]} : vector<16x8x4xf32> to vector<1x8x4xf32>
    %134 = vector.shape_cast %133 : vector<1x8x4xf32> to vector<8x4xf32>
    %c0_66 = arith.constant 0 : index
    %c28 = arith.constant 28 : index
    %135 = vector.load %arg15[%c0_66, %c28] : memref<16x32xf32, #tpu.memory_space<vmem>>, vector<8x4xf32>
    tpu.vector_store %arg15[%c0_66, %c28], %134 {strides = array<i32>} : memref<16x32xf32, #tpu.memory_space<vmem>>, vector<8x4xf32>,
    %136 = vector.extract_strided_slice %111 {offsets = [8, 0, 0], sizes = [1, 8, 4], strides = [1, 1, 1]} : vector<16x8x4xf32> to vector<1x8x4xf32>
    %137 = vector.shape_cast %136 : vector<1x8x4xf32> to vector<8x4xf32>
    %c8_67 = arith.constant 8 : index
    %c0_68 = arith.constant 0 : index
    %138 = vector.load %arg15[%c8_67, %c0_68] : memref<16x32xf32, #tpu.memory_space<vmem>>, vector<8x4xf32>
    tpu.vector_store %arg15[%c8_67, %c0_68], %137 {strides = array<i32>} : memref<16x32xf32, #tpu.memory_space<vmem>>, vector<8x4xf32>,
    %139 = vector.extract_strided_slice %111 {offsets = [9, 0, 0], sizes = [1, 8, 4], strides = [1, 1, 1]} : vector<16x8x4xf32> to vector<1x8x4xf32>
    %140 = vector.shape_cast %139 : vector<1x8x4xf32> to vector<8x4xf32>
    %c8_69 = arith.constant 8 : index
    %c4_70 = arith.constant 4 : index
    %141 = vector.load %arg15[%c8_69, %c4_70] : memref<16x32xf32, #tpu.memory_space<vmem>>, vector<8x4xf32>
    tpu.vector_store %arg15[%c8_69, %c4_70], %140 {strides = array<i32>} : memref<16x32xf32, #tpu.memory_space<vmem>>, vector<8x4xf32>,
    %142 = vector.extract_strided_slice %111 {offsets = [10, 0, 0], sizes = [1, 8, 4], strides = [1, 1, 1]} : vector<16x8x4xf32> to vector<1x8x4xf32>
    %143 = vector.shape_cast %142 : vector<1x8x4xf32> to vector<8x4xf32>
    %c8_71 = arith.constant 8 : index
    %c8_72 = arith.constant 8 : index
    %144 = vector.load %arg15[%c8_71, %c8_72] : memref<16x32xf32, #tpu.memory_space<vmem>>, vector<8x4xf32>
    tpu.vector_store %arg15[%c8_71, %c8_72], %143 {strides = array<i32>} : memref<16x32xf32, #tpu.memory_space<vmem>>, vector<8x4xf32>,
    %145 = vector.extract_strided_slice %111 {offsets = [11, 0, 0], sizes = [1, 8, 4], strides = [1, 1, 1]} : vector<16x8x4xf32> to vector<1x8x4xf32>
    %146 = vector.shape_cast %145 : vector<1x8x4xf32> to vector<8x4xf32>
    %c8_73 = arith.constant 8 : index
    %c12_74 = arith.constant 12 : index
    %147 = vector.load %arg15[%c8_73, %c12_74] : memref<16x32xf32, #tpu.memory_space<vmem>>, vector<8x4xf32>
    tpu.vector_store %arg15[%c8_73, %c12_74], %146 {strides = array<i32>} : memref<16x32xf32, #tpu.memory_space<vmem>>, vector<8x4xf32>,
    %148 = vector.extract_strided_slice %111 {offsets = [12, 0, 0], sizes = [1, 8, 4], strides = [1, 1, 1]} : vector<16x8x4xf32> to vector<1x8x4xf32>
    %149 = vector.shape_cast %148 : vector<1x8x4xf32> to vector<8x4xf32>
    %c8_75 = arith.constant 8 : index
    %c16_76 = arith.constant 16 : index
    %150 = vector.load %arg15[%c8_75, %c16_76] : memref<16x32xf32, #tpu.memory_space<vmem>>, vector<8x4xf32>
    tpu.vector_store %arg15[%c8_75, %c16_76], %149 {strides = array<i32>} : memref<16x32xf32, #tpu.memory_space<vmem>>, vector<8x4xf32>,
    %151 = vector.extract_strided_slice %111 {offsets = [13, 0, 0], sizes = [1, 8, 4], strides = [1, 1, 1]} : vector<16x8x4xf32> to vector<1x8x4xf32>
    %152 = vector.shape_cast %151 : vector<1x8x4xf32> to vector<8x4xf32>
    %c8_77 = arith.constant 8 : index
    %c20_78 = arith.constant 20 : index
    %153 = vector.load %arg15[%c8_77, %c20_78] : memref<16x32xf32, #tpu.memory_space<vmem>>, vector<8x4xf32>
    tpu.vector_store %arg15[%c8_77, %c20_78], %152 {strides = array<i32>} : memref<16x32xf32, #tpu.memory_space<vmem>>, vector<8x4xf32>,
    %154 = vector.extract_strided_slice %111 {offsets = [14, 0, 0], sizes = [1, 8, 4], strides = [1, 1, 1]} : vector<16x8x4xf32> to vector<1x8x4xf32>
    %155 = vector.shape_cast %154 : vector<1x8x4xf32> to vector<8x4xf32>
    %c8_79 = arith.constant 8 : index
    %c24_80 = arith.constant 24 : index
    %156 = vector.load %arg15[%c8_79, %c24_80] : memref<16x32xf32, #tpu.memory_space<vmem>>, vector<8x4xf32>
    tpu.vector_store %arg15[%c8_79, %c24_80], %155 {strides = array<i32>} : memref<16x32xf32, #tpu.memory_space<vmem>>, vector<8x4xf32>,
    %157 = vector.extract_strided_slice %111 {offsets = [15, 0, 0], sizes = [1, 8, 4], strides = [1, 1, 1]} : vector<16x8x4xf32> to vector<1x8x4xf32>
    %158 = vector.shape_cast %157 : vector<1x8x4xf32> to vector<8x4xf32>
    %c8_81 = arith.constant 8 : index
    %c28_82 = arith.constant 28 : index
    %159 = vector.load %arg15[%c8_81, %c28_82] : memref<16x32xf32, #tpu.memory_space<vmem>>, vector<8x4xf32>
    tpu.vector_store %arg15[%c8_81, %c28_82], %158 {strides = array<i32>} : memref<16x32xf32, #tpu.memory_space<vmem>>, vector<8x4xf32>,
    %c0_83 = arith.constant 0 : index
    %c0_84 = arith.constant 0 : index
    %160 = vector.load %arg15[%c0_83, %c0_84] : memref<16x32xf32, #tpu.memory_space<vmem>>, vector<16x32xf32>
    %c0_85 = arith.constant 0 : index
    %c0_86 = arith.constant 0 : index
    %161 = vector.load %arg5[%c0_85, %c0_86] : memref<32x32xf32, #tpu.memory_space<vmem>>, vector<32x32xf32>
    %cst_87 = arith.constant dense<0.000000e+00> : vector<16x32xf32>
    %162 = tpu.matmul %160, %161, %cst_87 {dimension_numbers = #tpu.dot_dimension_numbers<[1], [0], [0], [1], [0, 0, 1, 1], [], []>} : vector<16x32xf32>, vector<32x32xf32>, vector<16x32xf32> -> vector<16x32xf32>
    %c0_88 = arith.constant 0 : index
    %c0_89 = arith.constant 0 : index
    %163 = vector.load %arg6[%c0_88, %c0_89] : memref<1x32xf32, #tpu.memory_space<vmem>>, vector<1x32xf32>
    %164 = vector.broadcast %163 : vector<1x32xf32> to vector<16x32xf32>
    %165 = arith.addf %162, %164 : vector<16x32xf32>
    %166 = arith.addf %0, %165 : vector<16x32xf32>
    %c0_90 = arith.constant 0 : index
    %c0_91 = arith.constant 0 : index
    %167 = vector.load %arg7[%c0_90, %c0_91] : memref<1x32xf32, #tpu.memory_space<vmem>>, vector<1x32xf32>
    %c0_92 = arith.constant 0 : index
    %c0_93 = arith.constant 0 : index
    %168 = vector.load %arg8[%c0_92, %c0_93] : memref<1x32xf32, #tpu.memory_space<vmem>>, vector<1x32xf32>
    %cst_94 = arith.constant dense<0.000000e+00> : vector<16xf32>
    %169 = vector.multi_reduction <add>, %166, %cst_94 [1] : vector<16x32xf32> to vector<16xf32>
    %170 = vector.shape_cast %169 : vector<16xf32> to vector<16x1xf32>
    %cst_95 = arith.constant 3.200000e+01 : f32
    %171 = vector.broadcast %cst_95 : f32 to vector<16x1xf32>
    %172 = arith.divf %170, %171 : vector<16x1xf32>
    %173 = vector.broadcast %172 : vector<16x1xf32> to vector<16x32xf32>
    %174 = arith.subf %166, %173 : vector<16x32xf32>
    %175 = arith.mulf %174, %174 : vector<16x32xf32>
    %cst_96 = arith.constant dense<0.000000e+00> : vector<16xf32>
    %176 = vector.multi_reduction <add>, %175, %cst_96 [1] : vector<16x32xf32> to vector<16xf32>
    %177 = vector.shape_cast %176 : vector<16xf32> to vector<16x1xf32>
    %cst_97 = arith.constant 3.200000e+01 : f32
    %178 = vector.broadcast %cst_97 : f32 to vector<16x1xf32>
    %179 = arith.divf %177, %178 : vector<16x1xf32>
    %180 = vector.broadcast %172 : vector<16x1xf32> to vector<16x32xf32>
    %181 = arith.subf %166, %180 : vector<16x32xf32>
    %cst_98 = arith.constant 9.99999974E-6 : f32
    %182 = vector.broadcast %cst_98 : f32 to vector<16x1xf32>
    %183 = arith.addf %179, %182 : vector<16x1xf32>
    %184 = math.rsqrt %183 : vector<16x1xf32>
    %185 = vector.broadcast %184 : vector<16x1xf32> to vector<16x32xf32>
    %186 = arith.mulf %181, %185 : vector<16x32xf32>
    %187 = vector.broadcast %167 : vector<1x32xf32> to vector<16x32xf32>
    %188 = arith.mulf %186, %187 : vector<16x32xf32>
    %189 = vector.broadcast %168 : vector<1x32xf32> to vector<16x32xf32>
    %190 = arith.addf %188, %189 : vector<16x32xf32>
    %c0_99 = arith.constant 0 : index
    %c0_100 = arith.constant 0 : index
    %191 = vector.load %arg9[%c0_99, %c0_100] : memref<32x64xf32, #tpu.memory_space<vmem>>, vector<32x64xf32>
    %cst_101 = arith.constant dense<0.000000e+00> : vector<16x64xf32>
    %192 = tpu.matmul %190, %191, %cst_101 {dimension_numbers = #tpu.dot_dimension_numbers<[1], [0], [0], [1], [0, 0, 1, 1], [], []>} : vector<16x32xf32>, vector<32x64xf32>, vector<16x64xf32> -> vector<16x64xf32>
    %c0_102 = arith.constant 0 : index
    %c0_103 = arith.constant 0 : index
    %193 = vector.load %arg10[%c0_102, %c0_103] : memref<1x64xf32, #tpu.memory_space<vmem>>, vector<1x64xf32>
    %194 = vector.broadcast %193 : vector<1x64xf32> to vector<16x64xf32>
    %195 = arith.addf %192, %194 : vector<16x64xf32>
    %cst_104 = arith.constant 0.000000e+00 : f32
    %196 = vector.broadcast %cst_104 : f32 to vector<16x64xf32>
    %197 = arith.maximumf %195, %196 : vector<16x64xf32>
    %c0_105 = arith.constant 0 : index
    %c0_106 = arith.constant 0 : index
    %198 = vector.load %arg11[%c0_105, %c0_106] : memref<64x32xf32, #tpu.memory_space<vmem>>, vector<64x32xf32>
    %cst_107 = arith.constant dense<0.000000e+00> : vector<16x32xf32>
    %199 = tpu.matmul %197, %198, %cst_107 {dimension_numbers = #tpu.dot_dimension_numbers<[1], [0], [0], [1], [0, 0, 1, 1], [], []>} : vector<16x64xf32>, vector<64x32xf32>, vector<16x32xf32> -> vector<16x32xf32>
    %c0_108 = arith.constant 0 : index
    %c0_109 = arith.constant 0 : index
    %200 = vector.load %arg12[%c0_108, %c0_109] : memref<1x32xf32, #tpu.memory_space<vmem>>, vector<1x32xf32>
    %201 = vector.broadcast %200 : vector<1x32xf32> to vector<16x32xf32>
    %202 = arith.addf %199, %201 : vector<16x32xf32>
    %203 = arith.addf %166, %202 : vector<16x32xf32>
    %c0_110 = arith.constant 0 : index
    %c0_111 = arith.constant 0 : index
    %204 = vector.load %arg13[%c0_110, %c0_111] : memref<16x32xf32, #tpu.memory_space<vmem>>, vector<16x32xf32>
    tpu.vector_store %arg13[%c0_110, %c0_111], %203 {strides = array<i32>} : memref<16x32xf32, #tpu.memory_space<vmem>>, vector<16x32xf32>,
    return
  }
}

</mosaic_0001>

<bundles_post_ra>
// kernel: tpu_custom_call.1
= control target key start
LH: loop header
LB: loop body
LE: loop exit
PB: predicated region body
PF: predicated region fallthrough
CT: control target
= control target key end

     0   :  { %18 = vsyncpa [#allocation5], 0  ;;  %s2443_s0 = inlined_call_operand.hbm [shape: f32[16,32], index: 0, kind: input, shape index: {}]   ;;  %s2444_s1 = inlined_call_operand.hbm [shape: f32[1,32], index: 1, kind: input, shape index: {}]   ;;  %s2445_s2 = inlined_call_operand.vmem [shape: f32[1,32], index: 2, kind: input, shape index: {}]   ;;  %s2446_s3 = inlined_call_operand.vmem [shape: f32[32,96], index: 3, kind: input, shape index: {}]   ;;  %s2447_s4 = inlined_call_operand.vmem [shape: f32[1,96], index: 4, kind: input, shape index: {}]   ;;  %s2448_s5 = inlined_call_operand.vmem [shape: f32[32,32], index: 5, kind: input, shape index: {}]   ;;  %s2449_s6 = inlined_call_operand.vmem [shape: f32[1,32], index: 6, kind: input, shape index: {}]   ;;  %s2450_s7 = inlined_call_operand.vmem [shape: f32[1,32], index: 7, kind: input, shape index: {}]   ;;  %s2451_s8 = inlined_call_operand.vmem [shape: f32[1,32], index: 8, kind: input, shape index: {}]   ;;  %s2452_s9 = inlined_call_operand.vmem [shape: f32[32,64], index: 9, kind: input, shape index: {}]   ;;  %s2453_s10 = inlined_call_operand.vmem [shape: f32[1,64], index: 10, kind: input, shape index: {}]   ;;  %s2454_s11 = inlined_call_operand.vmem [shape: f32[64,32], index: 11, kind: input, shape index: {}]   ;;  %s2455_s12 = inlined_call_operand.vmem [shape: f32[1,32], index: 12, kind: input, shape index: {}]   ;;  %s2456_s13 = inlined_call_operand.hbm [shape: f32[16,32], index: 13, kind: output, shape index: {}]  }
   0x1   :  { %19 = vsyncpa [#allocation8], 0 }
   0x2   :  { %20 = vsyncpa [#allocation6], 0  ;;  %s25_s27 = sshll.u32 %s2443_s0, 4  ;;  %s1888_s28 = smov [#allocation4]   ;;  %s26_s27 = int_to_ptr.hbm [resolvable:$true] %s25_s27 }
   0x3   :  { %s27_s29 = sshll.u32 %s1888_s28, 4  ;;  %s39_s15 = sshll.u32 %s2444_s1, 4  ;;  %s28_s29 = int_to_ptr.vmem [resolvable:$true] %s27_s29  ;;  %s40_s15 = int_to_ptr.hbm [resolvable:$true] %s39_s15 }
   0x4   :  { %s1889_s16 = smov 128   ;;  %s1890_s17 = smov 8  }
   0x5   :  { %33 = dma.hbm_to_vmem [thread:$0]  %s26_s27, 256, %s28_s29, [#allocation5], %s1889_s16, %s1889_s16, %s1890_s17  }
   0x6   :  { %s1891_s18 = smov [#allocation7]  }
   0x7   :  { %s41_s19 = sshll.u32 %s1891_s18, 4  ;;  %s42_s19 = int_to_ptr.vmem [resolvable:$true] %s41_s19 }
   0x8   :  { %44 = dma.hbm_to_vmem [thread:$0]  %s40_s15, 16, %s42_s19, [#allocation8]  }
   0x9   :  { %1882 = dma.done.wait [#allocation5], 256  }
   0xa   :  { %1883 = vsyncadd [#allocation5], 4294967040 }
   0xb   :  { %1884 = dma.done.wait [#allocation8], 16  }
   0xc   :  { %1885 = vsyncadd [#allocation8], 4294967280  ;;  %vm79_vm0 = vcmask 261120   ;;  %v75_v0 = vld [vmem:[#allocation4] sm:$0xff]  ;;  %v76_v2 = vld [vmem:[#allocation4 + $0x8] sm:$0xff]  ;;  %v1892_v4 = vmov 32.0  }
   0xd   :  { %v80_v1 = vsel %vm79_vm0, %v75_v0, 0.0  ;;  %v83_v3 = vsel %vm79_vm0, %v76_v2, 0.0  ;;  %1734 = vrcp.f32 %v1892_v4  ;;  %v144_v21 = vld [vmem:[%s2446_s3 + $0x18] sm:$0xff]  ;;  %v143_v22 = vld [vmem:[%s2446_s3 + $0x10] sm:$0xff]  ;;  %v142_v23 = vld [vmem:[%s2446_s3 + $0x8] sm:$0xff]  ;;  %vm178_vm8 = vcmask 97280  }
   0xe   :  { %81 = vadd.xlane.f32.xlu0 %v80_v1  ;;  %167 = vmatpush.msra.mxu0 %v144_v21  ;;  %v141_v24 = vld [vmem:[%s2446_s3] sm:$0xff]  ;;  %s1894_s29 = smov 116   ;;  %s1895_s30 = smov 68   ;;  %vm289_vm9 = vcmask 31744   ;;  %vm735_vm10 = vcmask 64512   ;;  %vm1333_vm11 = vcmask 64544  }
   0xf   :  { %v1726_v39 = vld [vmem:[#allocation7] ss:$0 sm:$0xff]  ;;  %s1896_s14 = smov 56   ;;  %s1897_s15 = smov 104   ;;  %vm1339_vm12 = vcmask 97344   ;;  %vm1345_vm13 = vcmask 130144  }
  0x10   :  { %168 = vmatpush.msra.mxu0 %v143_v22  ;;  %v1727_v43 = vld [vmem:[%s2445_s2] ss:$0 sm:$0xff]  ;;  %s1893_s2 = smov 80   ;;  %s1899_s18 = smov 92   ;;  %vm1351_vm14 = vcmask 162944   ;;  %vm1357_vm15 = vcmask 195744  }
  0x11   :  { %v1728_v53 = vld [vmem:[%s2447_s4] ss:$0 sm:$0xff]  ;;  %s1898_s4 = smov 44   ;;  %s1900_s19 = smov 124  }
  0x12   :  { %169 = vmatpush.msra.mxu0 %v142_v23  ;;  %s1901_s0 = smov 120   ;;  %s1902_s1 = smov 4  }
  0x13   :  { %v1735_v5 = vpop.eup %1734  ;;  %s1903_s20 = smov 12   ;;  %s1904_s21 = smov 24  }
  0x14   :  { %v87_v6 = vmul.f32 32.0, %v1735_v5  ;;  %vm91_vm1 = vweird.f32 %v1735_v5  ;;  %170 = vmatpush.msra.mxu0 %v141_v24  ;;  %s1905_s22 = smov 16   ;;  %s1906_s23 = smov 20  }
  0x15   :  { %s1907_s24 = smov 28  }
  0x16   :  { %84 = vadd.xlane.f32.xlu0 %v83_v3  ;;  %v88_v7 = vsub.f32 1.0, %v87_v6 }
  0x18   :  { %v89_v8 = vmul.f32 %v1735_v5, %v88_v7 }
  0x1a   :  { %v90_v9 = vadd.f32 %v1735_v5, %v89_v8 }
  0x1c   :  { %v1990_v10 = vsel %vm91_vm1, %v1735_v5, %v90_v9  ;;  %vm1363_vm1 = vcmask 228544  }
  0x81   :  { %v82_v11 = vpop.xlane.xlu0 %81 }
  0x82   :  { %v93_v12 = vmul.f32 %v1990_v10, %v82_v11 }
  0x84   :  { %v95_v13 = vsub.f32 %v75_v0, %v93_v12 }
  0x86   :  { %v97_v14 = vmul.f32 %v95_v13, %v95_v13 }
  0x88   :  { %v99_v15 = vsel %vm79_vm0, %v97_v14, 0.0 }
  0x89   :  { %100 = vadd.xlane.f32.xlu1 %v99_v15  ;;  %v85_v16 = vpop.xlane.xlu0 %84 }
  0x8a   :  { %v94_v17 = vmul.f32 %v1990_v10, %v85_v16 }
  0x8c   :  { %v96_v18 = vsub.f32 %v76_v2, %v94_v17 }
  0x8e   :  { %v98_v19 = vmul.f32 %v96_v18, %v96_v18 }
  0x90   :  { %v102_v20 = vsel %vm79_vm0, %v98_v19, 0.0 }
  0x91   :  { %103 = vadd.xlane.f32.xlu1 %v102_v20 }
  0xfc   :  { %v101_v25 = vpop.xlane.xlu1 %100 }
  0xfd   :  { %v105_v26 = vmul.f32 %v101_v25, %v1990_v10 }
  0xff   :  { %v107_v27 = vadd.f32 1e-05, %v105_v26 }
 0x101   :  { %1736 = vrsqrt.f32 %v107_v27  ;;  %vm115_vm3 = vweird.f32 %v107_v27 }
 0x104   :  { %v104_v28 = vpop.xlane.xlu1 %103 }
 0x105   :  { %v106_v29 = vmul.f32 %v104_v28, %v1990_v10 }
 0x107   :  { %v1737_v30 = vpop.eup %1736  ;;  %v108_v31 = vadd.f32 1e-05, %v106_v29 }
 0x108   :  { %v110_v32 = vmul.f32 %v1737_v30, %v107_v27  ;;  %vm116_vm2 = vweird.f32 %v1737_v30 }
 0x109   :  { %1738 = vrsqrt.f32 %v108_v31  ;;  %vm117_vm4 = vmor %vm115_vm3, %vm116_vm2  ;;  %vm125_vm5 = vweird.f32 %v108_v31  ;;  %vm1369_vm2 = vcmask 261344  }
 0x10a   :  { %v111_v33 = vmul.f32 %v1737_v30, %v110_v32 }
 0x10c   :  { %v112_v34 = vmul.f32 0.5, %v111_v33 }
 0x10e   :  { %v113_v35 = vsub.f32 1.5, %v112_v34 }
 0x10f   :  { %v1739_v36 = vpop.eup %1738 }
 0x110   :  { %v114_v37 = vmul.f32 %v1737_v30, %v113_v35  ;;  %v120_v38 = vmul.f32 %v1739_v36, %v108_v31  ;;  %vm126_vm6 = vweird.f32 %v1739_v36 }
 0x111   :  { %vm127_vm7 = vmor %vm125_vm5, %vm126_vm6 }
 0x112   :  { %v118_v40 = vsel %vm117_vm4, %v1737_v30, %v114_v37  ;;  %v121_v41 = vmul.f32 %v1739_v36, %v120_v38 }
 0x113   :  { %v129_v42 = vmul.f32 %v118_v40, %v95_v13 }
 0x114   :  { %v122_v44 = vmul.f32 0.5, %v121_v41 }
 0x115   :  { %v134_v45 = vmul.f32 %v1726_v39, %v129_v42 }
 0x116   :  { %v123_v46 = vsub.f32 1.5, %v122_v44 }
 0x117   :  { %v139_v47 = vadd.f32 %v1727_v43, %v134_v45 }
 0x118   :  { %v124_v48 = vmul.f32 %v1739_v36, %v123_v46 }
 0x119   :  { %1609 = vmatmul.msk.f32.vlgmr.msra.gmra.mxu0 %vm79_vm0, %v139_v47 }
 0x11a   :  { %v128_v49 = vsel %vm127_vm7, %v1739_v36, %v124_v48 }
 0x11b   :  { %v130_v50 = vmul.f32 %v128_v49, %v96_v18 }
 0x11d   :  { %v135_v51 = vmul.f32 %v1726_v39, %v130_v50 }
 0x11f   :  { %v140_v52 = vadd.f32 %v1727_v43, %v135_v51 }
 0x121   :  { %1610 = vmatmul.msk.f32.gmra.mxu0 %vm79_vm0, %v140_v52 }
 0x196   :  { %v172_v54 = vpop.f32.mrf.mxu0 }
 0x197   :  { %v173_v55 = vadd.f32 %v1728_v53, %v172_v54 }
 0x199   :  { %179 = vst.msk [vmem:[#allocation2] sm:$0xff] %vm178_vm8, %v173_v55  ;;  %196 = vrot.lane.b32.xlu0 %v173_v55, %s1893_s2  ;;  %181 = vrot.lane.b32.xlu2 %v173_v55, %s1894_s29 }
 0x19a   :  { %201 = vrot.lane.b32.xlu1 %v173_v55, %s1895_s30 }
 0x19e   :  { %v175_v56 = vpop.f32.mrf.mxu0 }
 0x19f   :  { %v176_v57 = vadd.f32 %v1728_v53, %v175_v56 }
 0x1a0   :  { %v2020_v58 = vld [vmem:[#allocation2] sm:$0xff] }
 0x1a1   :  { %217 = vst.msk [vmem:[#allocation2 + $0x40] sm:$0xff] %vm178_vm8, %v176_v57  ;;  %206 = vrot.lane.b32.xlu0 %v173_v55, %s1896_s14  ;;  %186 = vrot.lane.b32.xlu2 %v173_v55, %s1897_s15  ;;  %v270_v17 = vmul.f32 0.5, %v2020_v58 }
 0x1a2   :  { %249 = vrot.lane.b32.xlu1 %v176_v57, %s1898_s4 }
 0x1a8   :  { %v2055_v14 = vld [vmem:[#allocation2 + $0x40] sm:$0xff] }
 0x1a9   :  { %191 = vrot.lane.b32.xlu2 %v173_v55, %s1899_s18  ;;  %219 = vrot.lane.b32.xlu0 %v176_v57, %s1894_s29  ;;  %v278_v53 = vmul.f32 0.5, %v2055_v14 }
 0x1aa   :  { %287 = vrot.lane.b32.xlu1 %v2020_v58, %s1900_s19 }
 0x1b1   :  { %211 = vrot.lane.b32.xlu2 %v173_v55, %s1898_s4  ;;  %239 = vrot.lane.b32.xlu0 %v176_v57, %s1895_s30 }
 0x1b9   :  { %229 = vrot.lane.b32.xlu2 %v176_v57, %s1899_s18 }
 0x1c1   :  { %234 = vrot.lane.b32.xlu2 %v176_v57, %s1893_s2 }
 0x1c9   :  { %224 = vrot.lane.b32.xlu2 %v176_v57, %s1897_s15 }
 0x1d1   :  { %244 = vrot.lane.b32.xlu2 %v176_v57, %s1896_s14 }
 0x1f3   :  { %v182_v59 = vpop.permute.xlu2 %181 }
 0x1f4   :  { %185 = vst.msk [vmem:[#allocation2 + $0x8] sm:$0xff] %vm178_vm8, %v182_v59 }
 0x1fb   :  { %v187_v60 = vpop.permute.xlu2 %186  ;;  %v2025_v61 = vld [vmem:[#allocation2 + $0x8] sm:$0xff] }
 0x1fc   :  { %190 = vst.msk [vmem:[#allocation2 + $0x10] sm:$0xff] %vm178_vm8, %v187_v60  ;;  %316 = vrot.lane.b32.xlu1 %v2025_v61, %s1900_s19  ;;  %v271_v35 = vmul.f32 0.5, %v2025_v61 }
 0x203   :  { %v192_v62 = vpop.permute.xlu2 %191  ;;  %v2030_v63 = vld [vmem:[#allocation2 + $0x10] sm:$0xff] }
 0x204   :  { %195 = vst.msk [vmem:[#allocation2 + $0x18] sm:$0xff] %vm178_vm8, %v192_v62  ;;  %344 = vrot.lane.b32.xlu0 %v2030_v63, %s1900_s19  ;;  %v1691_v31 = vpack.i.bf16 %v2030_v63, %v2025_v61  ;;  %v272_v40 = vmul.f32 0.5, %v2030_v63 }
 0x20b   :  { %v212_v0 = vpop.permute.xlu2 %211  ;;  %v197_v1 = vpop.permute.xlu0 %196  ;;  %v2035_v2 = vld [vmem:[#allocation2 + $0x18] sm:$0xff] }
 0x20c   :  { %215 = vst.msk [vmem:[#allocation2 + $0x38] sm:$0xff] %vm178_vm8, %v212_v0  ;;  %v202_v3 = vpop.permute.xlu1 %201  ;;  %372 = vrot.lane.b32.xlu0 %v2035_v2, %s1900_s19  ;;  %v1686_v29 = vpack.i.bf16 %v2035_v2, %v2020_v58  ;;  %v273_v44 = vmul.f32 0.5, %v2035_v2 }
 0x20d   :  { %205 = vst.msk [vmem:[#allocation2 + $0x28] sm:$0xff] %vm178_vm8, %v202_v3 }
 0x20e   :  { %200 = vst.msk [vmem:[#allocation2 + $0x20] sm:$0xff] %vm178_vm8, %v197_v1 }
 0x213   :  { %v230_v4 = vpop.permute.xlu2 %229  ;;  %v207_v5 = vpop.permute.xlu0 %206  ;;  %v261_v15 = vld [vmem:[#allocation2 + $0x38] sm:$0xff] }
 0x214   :  { %233 = vst.msk [vmem:[#allocation2 + $0x58] sm:$0xff] %vm178_vm8, %v230_v4  ;;  %v250_v6 = vpop.permute.xlu1 %249  ;;  %v2043_v7 = vld [vmem:[#allocation2 + $0x28] sm:$0xff]  ;;  %v277_v42 = vmul.f32 0.5, %v261_v15 }
 0x215   :  { %253 = vst.msk [vmem:[#allocation2 + $0x78] sm:$0xff] %vm178_vm8, %v250_v6  ;;  %428 = vrot.lane.b32.xlu1 %v2043_v7, %s1900_s19  ;;  %v258_v8 = vld [vmem:[#allocation2 + $0x20] sm:$0xff]  ;;  %v275_v48 = vmul.f32 0.5, %v2043_v7 }
 0x216   :  { %210 = vst.msk [vmem:[#allocation2 + $0x30] sm:$0xff] %vm178_vm8, %v207_v5  ;;  %400 = vrot.lane.b32.xlu2 %v258_v8, %s1900_s19  ;;  %v1696_v33 = vpack.i.bf16 %v261_v15, %v258_v8  ;;  %v274_v38 = vmul.f32 0.5, %v258_v8 }
 0x21b   :  { %v235_v9 = vpop.permute.xlu2 %234  ;;  %v220_v11 = vpop.permute.xlu0 %219  ;;  %v2050_v12 = vld [vmem:[#allocation2 + $0x58] sm:$0xff] }
 0x21c   :  { %238 = vst.msk [vmem:[#allocation2 + $0x60] sm:$0xff] %vm178_vm8, %v235_v9  ;;  %v288_v13 = vpop.permute.xlu1 %287  ;;  %596 = vrot.lane.b32.xlu0 %v2050_v12, %s1900_s19  ;;  %v2070_v22 = vld [vmem:[#allocation2 + $0x78] sm:$0xff]  ;;  %v281_v52 = vmul.f32 0.5, %v2050_v12 }
 0x21d   :  { %223 = vst.msk [vmem:[#allocation2 + $0x48] sm:$0xff] %vm178_vm8, %v220_v11  ;;  %512 = vrot.lane.b32.xlu1 %v2055_v14, %s1900_s19  ;;  %1611 = vmatpush.xpose.msk.msra.mxu2 %vm289_vm9, %v288_v13  ;;  %v2061_v16 = vld [vmem:[#allocation2 + $0x30] sm:$0xff]  ;;  %v285_v56 = vmul.f32 0.5, %v2070_v22 }
 0x21e   :  { %484 = vrot.lane.b32.xlu2 %v261_v15, %s1900_s19  ;;  %v1701_v18 = vpack.i.bf16 %v2061_v16, %v2043_v7  ;;  %v276_v46 = vmul.f32 0.5, %v2061_v16 }
 0x220   :  { %1612 = vmatmul.msk.f32.vlgmr.msra.gmra.mxu2 %vm289_vm9, %v270_v17 }
 0x223   :  { %v225_v19 = vpop.permute.xlu2 %224  ;;  %v240_v20 = vpop.permute.xlu0 %239  ;;  %v2068_v21 = vld [vmem:[#allocation2 + $0x60] sm:$0xff] }
 0x224   :  { %228 = vst.msk [vmem:[#allocation2 + $0x50] sm:$0xff] %vm178_vm8, %v225_v19  ;;  %708 = vrot.lane.b32.xlu0 %v2070_v22, %s1900_s19  ;;  %v1716_v23 = vpack.i.bf16 %v2070_v22, %v2068_v21  ;;  %v2084_v26 = vld [vmem:[#allocation2 + $0x48] sm:$0xff]  ;;  %v282_v57 = vmul.f32 0.5, %v2068_v21 }
 0x225   :  { %243 = vst.msk [vmem:[#allocation2 + $0x68] sm:$0xff] %vm178_vm8, %v240_v20  ;;  %624 = vrot.lane.b32.xlu1 %v2068_v21, %s1900_s19  ;;  %v279_v49 = vmul.f32 0.5, %v2084_v26 }
 0x226   :  { %456 = vrot.lane.b32.xlu2 %v2061_v16, %s1900_s19 }
 0x22b   :  { %v245_v24 = vpop.permute.xlu2 %244  ;;  %v2082_v25 = vld [vmem:[#allocation2 + $0x50] sm:$0xff] }
 0x22c   :  { %248 = vst.msk [vmem:[#allocation2 + $0x70] sm:$0xff] %vm178_vm8, %v245_v24  ;;  %v2087_v27 = vld [vmem:[#allocation2 + $0x68] sm:$0xff]  ;;  %v1711_v28 = vpack.i.bf16 %v2082_v25, %v2084_v26  ;;  %v280_v61 = vmul.f32 0.5, %v2082_v25 }
 0x22d   :  { %568 = vrot.lane.b32.xlu1 %v2082_v25, %s1900_s19  ;;  %652 = vrot.lane.b32.xlu0 %v2087_v27, %s1900_s19  ;;  %v283_v62 = vmul.f32 0.5, %v2087_v27 }
 0x22e   :  { %540 = vrot.lane.b32.xlu2 %v2084_v26, %s1900_s19 }
 0x233   :  { %v2099_v30 = vld [vmem:[#allocation2 + $0x70] sm:$0xff] }
 0x234   :  { %v1721_v32 = vpack.i.bf16 %v2099_v30, %v2087_v27  ;;  %v284_v9 = vmul.f32 0.5, %v2099_v30 }
 0x235   :  { %1687 = vrot.lane.b32.xlu1 %v1686_v29, %s1901_s0  ;;  %1692 = vrot.lane.b32.xlu0 %v1691_v31, %s1901_s0 }
 0x236   :  { %680 = vrot.lane.b32.xlu2 %v2099_v30, %s1900_s19 }
 0x23e   :  { %1697 = vrot.lane.b32.xlu2 %v1696_v33, %s1901_s0 }
 0x26e   :  { %v317_v34 = vpop.permute.xlu1 %316 }
 0x26f   :  { %1613 = vmatpush.xpose.msk.msrb.mxu2 %vm289_vm9, %v317_v34 }
 0x270   :  { %v401_v36 = vpop.permute.xlu2 %400 }
 0x272   :  { %1614 = vmatmul.msk.f32.vlgmr.msrb.gmra.mxu2 %vm289_vm9, %v271_v35 }
 0x273   :  { %1619 = vmatpush.xpose.msk.msra.mxu2 %vm289_vm9, %v401_v36 }
 0x276   :  { %v345_v37 = vpop.permute.xlu0 %344 }
 0x277   :  { %1615 = vmatpush.xpose.msk.msra.mxu3 %vm289_vm9, %v345_v37 }
 0x278   :  { %v485_v39 = vpop.permute.xlu2 %484 }
 0x279   :  { %1625 = vmatpush.xpose.msk.msrb.mxu2 %vm289_vm9, %v485_v39 }
 0x27a   :  { %1616 = vmatmul.msk.f32.vlgmr.msra.gmra.mxu3 %vm289_vm9, %v272_v40  ;;  %1620 = vmatmul.msk.f32.vlgmr.msra.gmra.mxu2 %vm289_vm9, %v274_v38 }
 0x27e   :  { %v373_v41 = vpop.permute.xlu0 %372 }
 0x27f   :  { %1617 = vmatpush.xpose.msk.msra.mxu1 %vm289_vm9, %v373_v41 }
 0x280   :  { %v457_v43 = vpop.permute.xlu2 %456 }
 0x282   :  { %1618 = vmatmul.msk.f32.vlgmr.msra.gmra.mxu1 %vm289_vm9, %v273_v44  ;;  %1626 = vmatmul.msk.f32.vlgmr.msrb.gmra.mxu2 %vm289_vm9, %v277_v42 }
 0x283   :  { %1623 = vmatpush.xpose.msk.msrb.mxu1 %vm289_vm9, %v457_v43 }
 0x287   :  { %v429_v45 = vpop.permute.xlu1 %428 }
 0x288   :  { %v541_v47 = vpop.permute.xlu2 %540  ;;  %1621 = vmatpush.xpose.msk.msrb.mxu3 %vm289_vm9, %v429_v45 }
 0x289   :  { %1629 = vmatpush.xpose.msk.msrb.mxu0 %vm289_vm9, %v541_v47 }
 0x28a   :  { %1624 = vmatmul.msk.f32.vlgmr.msrb.gmra.mxu1 %vm289_vm9, %v276_v46 }
 0x28b   :  { %1622 = vmatmul.msk.f32.vlgmr.msrb.gmra.mxu3 %vm289_vm9, %v275_v48 }
 0x28c   :  { %1630 = vmatmul.msk.f32.vlgmr.msrb.gmra.mxu0 %vm289_vm9, %v279_v49 }
 0x28e   :  { %v597_v50 = vpop.permute.xlu0 %596 }
 0x28f   :  { %v513_v51 = vpop.permute.xlu1 %512  ;;  %1633 = vmatpush.xpose.msk.msra.mxu2 %vm289_vm9, %v597_v50 }
 0x290   :  { %1627 = vmatpush.xpose.msk.msra.mxu3 %vm289_vm9, %v513_v51  ;;  %v681_v58 = vpop.permute.xlu2 %680 }
 0x292   :  { %1634 = vmatmul.msk.f32.vlgmr.msra.gmra.mxu2 %vm289_vm9, %v281_v52 }
 0x293   :  { %1628 = vmatmul.msk.f32.vlgmr.msra.gmra.mxu3 %vm289_vm9, %v278_v53 }
 0x296   :  { %v709_v54 = vpop.permute.xlu0 %708 }
 0x297   :  { %v625_v55 = vpop.permute.xlu1 %624  ;;  %1641 = vmatpush.xpose.msk.msrb.mxu2 %vm289_vm9, %v709_v54 }
 0x298   :  { %1635 = vmatpush.xpose.msk.msrb.mxu3 %vm289_vm9, %v625_v55  ;;  %v1698_v1 = vpop.permute.xlu2 %1697 }
 0x299   :  { %v1699_v11 = vunpack.i.l.bf16 %v1698_v1  ;;  %v1700_v13 = vunpack.i.h.bf16 %v1698_v1 }
 0x29a   :  { %1642 = vmatmul.msk.f32.vlgmr.msrb.gmra.mxu2 %vm289_vm9, %v285_v56 }
 0x29b   :  { %1636 = vmatmul.msk.f32.vlgmr.msrb.gmra.mxu3 %vm289_vm9, %v282_v57 }
 0x29f   :  { %v569_v59 = vpop.permute.xlu1 %568  ;;  %v653_v60 = vpop.permute.xlu0 %652 }
 0x2a0   :  { %1631 = vmatpush.xpose.msk.msra.mxu1 %vm289_vm9, %v569_v59  ;;  %1637 = vmatpush.xpose.msk.msra.mxu0 %vm289_vm9, %v653_v60 }
 0x2a3   :  { %v312_v63 = vpop.f32.mrf.mxu2  ;;  %1632 = vmatmul.msk.f32.vlgmr.msra.gmra.mxu1 %vm289_vm9, %v280_v61  ;;  %1638 = vmatmul.msk.f32.vlgmr.msra.gmra.mxu0 %vm289_vm9, %v283_v62  ;;  %v1706_v61 = vpack.i.bf16 %v2050_v12, %v2055_v14 }
 0x2a4   :  { %1639 = vmatpush.xpose.msk.msrb.mxu1 %vm289_vm9, %v681_v58  ;;  %v736_v0 = vsel %vm735_vm10, %v312_v63, -inf }
 0x2a5   :  { %737 = vmax.xlane.f32.xlu1 %v736_v0 }
 0x2a7   :  { %v1688_v2 = vpop.permute.xlu1 %1687  ;;  %v1693_v3 = vpop.permute.xlu0 %1692 }
 0x2a8   :  { %v1690_v4 = vunpack.i.h.bf16 %v1688_v2  ;;  %v1689_v5 = vunpack.i.l.bf16 %v1688_v2  ;;  %v1695_v6 = vunpack.i.h.bf16 %v1693_v3  ;;  %v1694_v8 = vunpack.i.l.bf16 %v1693_v3 }
 0x2aa   :  { %933 = vmatpush.msra.mxu3 %v1689_v5  ;;  %959 = vmatpush.msrb.mxu0 %v1694_v8 }
 0x2ab   :  { %985 = vmatpush.msra.mxu1 %v1695_v6  ;;  %1011 = vmatpush.msra.mxu2 %v1690_v4 }
 0x2ac   :  { %1640 = vmatmul.msk.f32.vlgmr.msrb.gmra.mxu1 %vm289_vm9, %v284_v9  ;;  %1037 = vmatpush.msrb.mxu3 %v1699_v11 }
 0x2ad   :  { %1115 = vmatpush.msrb.mxu2 %v1700_v13 }
 0x2f5   :  { %v340_v15 = vpop.f32.mrf.mxu2 }
 0x2f6   :  { %v739_v17 = vsel %vm735_vm10, %v340_v15, -inf }
 0x2f7   :  { %740 = vmax.xlane.f32.xlu2 %v739_v17 }
 0x2fd   :  { %v368_v19 = vpop.f32.mrf.mxu3  ;;  %v2161_v34 = vpop.f32.mrf.mxu2 }
 0x2fe   :  { %v742_v20 = vsel %vm735_vm10, %v368_v19, -inf  ;;  %v748_v41 = vsel %vm735_vm10, %v2161_v34, -inf }
 0x2ff   :  { %743 = vmax.xlane.f32.xlu1 %v742_v20  ;;  %v396_v24 = vpop.f32.mrf.mxu1 }
 0x300   :  { %v745_v29 = vsel %vm735_vm10, %v396_v24, -inf }
 0x301   :  { %746 = vmax.xlane.f32.xlu0 %v745_v29 }
 0x305   :  { %v2171_v39 = vpop.f32.mrf.mxu2 }
 0x306   :  { %v757_v56 = vsel %vm735_vm10, %v2171_v39, -inf }
 0x307   :  { %v2157_v31 = vpop.f32.mrf.mxu1 }
 0x308   :  { %v754_v33 = vsel %vm735_vm10, %v2157_v31, -inf }
 0x309   :  { %755 = vmax.xlane.f32.xlu0 %v754_v33  ;;  %v2163_v35 = vpop.f32.mrf.mxu0 }
 0x30a   :  { %v763_v38 = vsel %vm735_vm10, %v2163_v35, -inf }
 0x30e   :  { %v2165_v36 = vpop.f32.mrf.mxu3 }
 0x30f   :  { %v751_v37 = vsel %vm735_vm10, %v2165_v36, -inf }
 0x310   :  { %752 = vmax.xlane.f32.xlu1 %v751_v37 }
 0x311   :  { %764 = vmax.xlane.f32.xlu0 %v763_v38 }
 0x315   :  { %v2175_v44 = vpop.f32.mrf.mxu2 }
 0x316   :  { %v2197_v55 = vpop.f32.mrf.mxu3  ;;  %v769_v57 = vsel %vm735_vm10, %v2175_v44, -inf }
 0x317   :  { %v760_v59 = vsel %vm735_vm10, %v2197_v55, -inf }
 0x318   :  { %v738_v40 = vpop.xlane.xlu1 %737 }
 0x319   :  { %v784_v42 = vsub.f32 %v312_v63, %v738_v40  ;;  %749 = vmax.xlane.f32.xlu0 %v748_v41 }
 0x31b   :  { %v800_v43 = vmul.f32 1.442695, %v784_v42 }
 0x31d   :  { %1740 = vpow2.f32 %v800_v43  ;;  %v2187_v50 = vpop.f32.mrf.mxu2 }
 0x31e   :  { %v781_v54 = vsel %vm735_vm10, %v2187_v50, -inf  ;;  %v2203_v58 = vpop.f32.mrf.mxu3 }
 0x31f   :  { %v772_v60 = vsel %vm735_vm10, %v2203_v58, -inf }
 0x320   :  { %v2177_v45 = vpop.f32.mrf.mxu1  ;;  %v2185_v49 = vpop.f32.mrf.mxu0 }
 0x321   :  { %v766_v46 = vsel %vm735_vm10, %v2177_v45, -inf  ;;  %v775_v52 = vsel %vm735_vm10, %v2185_v49, -inf }
 0x322   :  { %767 = vmax.xlane.f32.xlu2 %v766_v46 }
 0x323   :  { %v2181_v47 = vpop.eup %1740 }
 0x324   :  { %v832_v48 = vsel %vm735_vm10, %v2181_v47, 0.0 }
 0x325   :  { %833 = vadd.xlane.f32.xlu0 %v832_v48 }
 0x329   :  { %v2189_v51 = vpop.f32.mrf.mxu1 }
 0x32a   :  { %v778_v53 = vsel %vm735_vm10, %v2189_v51, -inf  ;;  %776 = vmax.xlane.f32.xlu2 %v775_v52 }
 0x32b   :  { %779 = vmax.xlane.f32.xlu1 %v778_v53 }
 0x32d   :  { %782 = vmax.xlane.f32.xlu0 %v781_v54 }
 0x332   :  { %758 = vmax.xlane.f32.xlu2 %v757_v56 }
 0x333   :  { %770 = vmax.xlane.f32.xlu1 %v769_v57 }
 0x33a   :  { %761 = vmax.xlane.f32.xlu2 %v760_v59 }
 0x33b   :  { %773 = vmax.xlane.f32.xlu1 %v772_v60 }
 0x341   :  { %1707 = vrot.lane.b32.xlu0 %v1706_v61, %s1901_s0 }
 0x36a   :  { %v741_v62 = vpop.xlane.xlu2 %740 }
 0x36b   :  { %v785_v63 = vsub.f32 %v340_v15, %v741_v62 }
 0x36d   :  { %v802_v0 = vmul.f32 1.442695, %v785_v63 }
 0x36f   :  { %1742 = vpow2.f32 %v802_v0 }
 0x372   :  { %v744_v1 = vpop.xlane.xlu1 %743 }
 0x373   :  { %v786_v2 = vsub.f32 %v368_v19, %v744_v1 }
 0x374   :  { %v747_v3 = vpop.xlane.xlu0 %746 }
 0x375   :  { %v2212_v4 = vpop.eup %1742  ;;  %v804_v5 = vmul.f32 1.442695, %v786_v2  ;;  %v787_v6 = vsub.f32 %v396_v24, %v747_v3 }
 0x376   :  { %v835_v8 = vsel %vm735_vm10, %v2212_v4, 0.0 }
 0x377   :  { %1744 = vpow2.f32 %v804_v5  ;;  %v806_v9 = vmul.f32 1.442695, %v787_v6  ;;  %836 = vadd.xlane.f32.xlu1 %v835_v8 }
 0x379   :  { %1746 = vpow2.f32 %v806_v9 }
 0x37c   :  { %v756_v12 = vpop.xlane.xlu0 %755 }
 0x37d   :  { %v2216_v14 = vpop.eup %1744  ;;  %v790_v11 = vsub.f32 %v2157_v31, %v756_v12 }
 0x37e   :  { %v838_v13 = vsel %vm735_vm10, %v2216_v14, 0.0 }
 0x37f   :  { %v2221_v15 = vpop.eup %1746  ;;  %v812_v17 = vmul.f32 1.442695, %v790_v11  ;;  %839 = vadd.xlane.f32.xlu0 %v838_v13 }
 0x380   :  { %v841_v19 = vsel %vm735_vm10, %v2221_v15, 0.0 }
 0x381   :  { %1748 = vpow2.f32 %v812_v17  ;;  %842 = vadd.xlane.f32.xlu2 %v841_v19 }
 0x383   :  { %v753_v37 = vpop.xlane.xlu1 %752 }
 0x384   :  { %v765_v20 = vpop.xlane.xlu0 %764  ;;  %v789_v42 = vsub.f32 %v2165_v36, %v753_v37 }
 0x385   :  { %v793_v24 = vsub.f32 %v2163_v35, %v765_v20 }
 0x386   :  { %v810_v46 = vmul.f32 1.442695, %v789_v42 }
 0x387   :  { %v2226_v29 = vpop.eup %1748  ;;  %v818_v33 = vmul.f32 1.442695, %v793_v24 }
 0x388   :  { %v850_v31 = vsel %vm735_vm10, %v2226_v29, 0.0 }
 0x389   :  { %1750 = vpow2.f32 %v818_v33  ;;  %851 = vadd.xlane.f32.xlu0 %v850_v31 }
 0x38c   :  { %v750_v38 = vpop.xlane.xlu0 %749 }
 0x38d   :  { %v788_v40 = vsub.f32 %v2161_v34, %v750_v38 }
 0x38f   :  { %v2231_v41 = vpop.eup %1750  ;;  %v808_v43 = vmul.f32 1.442695, %v788_v40 }
 0x390   :  { %1702 = vrot.lane.b32.xlu1 %v1701_v18, %s1901_s0  ;;  %v859_v35 = vsel %vm735_vm10, %v2231_v41, 0.0 }
 0x391   :  { %1752 = vpow2.f32 %v808_v43  ;;  %860 = vadd.xlane.f32.xlu0 %v859_v35 }
 0x392   :  { %1754 = vpow2.f32 %v810_v46 }
 0x395   :  { %v768_v48 = vpop.xlane.xlu2 %767 }
 0x396   :  { %v794_v34 = vsub.f32 %v2177_v45, %v768_v48 }
 0x397   :  { %v2240_v52 = vpop.eup %1752 }
 0x398   :  { %v834_v53 = vpop.xlane.xlu0 %833  ;;  %v844_v36 = vsel %vm735_vm10, %v2240_v52, 0.0  ;;  %v820_v7 = vmul.f32 1.442695, %v794_v34  ;;  %v2245_v16 = vpop.eup %1754 }
 0x399   :  { %1756 = vrcp.f32 %v834_v53  ;;  %845 = vadd.xlane.f32.xlu2 %v844_v36  ;;  %v847_v45 = vsel %vm735_vm10, %v2245_v16, 0.0 }
 0x39a   :  { %1758 = vpow2.f32 %v820_v7 }
 0x39d   :  { %v777_v18 = vpop.xlane.xlu2 %776 }
 0x39e   :  { %v780_v54 = vpop.xlane.xlu1 %779  ;;  %v797_v57 = vsub.f32 %v2185_v49, %v777_v18 }
 0x39f   :  { %v1757_v56 = vpop.eup %1756 }
 0x3a0   :  { %v896_v59 = vmul.f32 %v1757_v56, %v2181_v47  ;;  %v826_v60 = vmul.f32 1.442695, %v797_v57  ;;  %v2252_v61 = vpop.eup %1758  ;;  %v783_v49 = vpop.xlane.xlu0 %782 }
 0x3a1   :  { %848 = vadd.xlane.f32.xlu2 %v847_v45  ;;  %v862_v47 = vsel %vm735_vm10, %v2252_v61, 0.0  ;;  %v799_v12 = vsub.f32 %v2187_v50, %v783_v49 }
 0x3a2   :  { %1643 = vmatmul.msk.f32.vlgmr.msra.gmra.mxu3 %vm735_vm10, %v896_v59  ;;  %1760 = vpow2.f32 %v826_v60 }
 0x3a3   :  { %v830_v19 = vmul.f32 1.442695, %v799_v12 }
 0x3a5   :  { %v759_v62 = vpop.xlane.xlu2 %758 }
 0x3a6   :  { %v771_v63 = vpop.xlane.xlu1 %770  ;;  %v791_v0 = vsub.f32 %v2171_v39, %v759_v62 }
 0x3a7   :  { %v795_v1 = vsub.f32 %v2175_v44, %v771_v63 }
 0x3a8   :  { %v814_v2 = vmul.f32 1.442695, %v791_v0  ;;  %v2258_v5 = vpop.eup %1760 }
 0x3a9   :  { %863 = vadd.xlane.f32.xlu2 %v862_v47  ;;  %v822_v3 = vmul.f32 1.442695, %v795_v1  ;;  %v871_v13 = vsel %vm735_vm10, %v2258_v5, 0.0 }
 0x3aa   :  { %1762 = vpow2.f32 %v814_v2 }
 0x3ab   :  { %1764 = vpow2.f32 %v822_v3 }
 0x3ad   :  { %v762_v6 = vpop.xlane.xlu2 %761 }
 0x3ae   :  { %v774_v8 = vpop.xlane.xlu1 %773  ;;  %v792_v9 = vsub.f32 %v2197_v55, %v762_v6 }
 0x3af   :  { %v796_v44 = vsub.f32 %v2203_v58, %v774_v8  ;;  %v798_v58 = vsub.f32 %v2189_v51, %v780_v54 }
 0x3b0   :  { %v2262_v39 = vpop.eup %1762  ;;  %v816_v11 = vmul.f32 1.442695, %v792_v9 }
 0x3b1   :  { %v853_v17 = vsel %vm735_vm10, %v2262_v39, 0.0  ;;  %872 = vadd.xlane.f32.xlu2 %v871_v13  ;;  %v824_v55 = vmul.f32 1.442695, %v796_v44  ;;  %v2269_v50 = vpop.eup %1764  ;;  %v828_v38 = vmul.f32 1.442695, %v798_v58 }
 0x3b2   :  { %1766 = vpow2.f32 %v816_v11  ;;  %854 = vadd.xlane.f32.xlu0 %v853_v17  ;;  %v865_v37 = vsel %vm735_vm10, %v2269_v50, 0.0 }
 0x3b3   :  { %v1708_v20 = vpop.permute.xlu0 %1707  ;;  %1768 = vpow2.f32 %v830_v19 }
 0x3b4   :  { %v1709_v24 = vunpack.i.l.bf16 %v1708_v20  ;;  %1770 = vpow2.f32 %v824_v55  ;;  %v1710_v21 = vunpack.i.h.bf16 %v1708_v20 }
 0x3b5   :  { %1772 = vpow2.f32 %v828_v38 }
 0x3b6   :  { %1141 = vmatpush.msra.mxu3 %v1709_v24 }
 0x3b8   :  { %v2271_v33 = vpop.eup %1766 }
 0x3b9   :  { %v856_v31 = vsel %vm735_vm10, %v2271_v33, 0.0  ;;  %v2278_v40 = vpop.eup %1768 }
 0x3ba   :  { %857 = vadd.xlane.f32.xlu2 %v856_v31  ;;  %866 = vadd.xlane.f32.xlu1 %v865_v37  ;;  %v2280_v42 = vpop.eup %1770  ;;  %v877_v43 = vsel %vm735_vm10, %v2278_v40, 0.0 }
 0x3bb   :  { %v868_v51 = vsel %vm735_vm10, %v2280_v42, 0.0  ;;  %v2286_v35 = vpop.eup %1772 }
 0x3bc   :  { %v874_v46 = vsel %vm735_vm10, %v2286_v35, 0.0 }
 0x3c2   :  { %878 = vadd.xlane.f32.xlu2 %v877_v43  ;;  %869 = vadd.xlane.f32.xlu1 %v868_v51 }
 0x3c6   :  { %1712 = vrot.lane.b32.xlu0 %v1711_v28, %s1901_s0 }
 0x3ca   :  { %875 = vadd.xlane.f32.xlu1 %v874_v46 }
 0x3ce   :  { %1722 = vrot.lane.b32.xlu0 %v1721_v32, %s1901_s0 }
 0x3da   :  { %1717 = vrot.lane.b32.xlu2 %v1716_v23, %s1901_s0 }
 0x3ea   :  { %v837_v48 = vpop.xlane.xlu1 %836 }
 0x3eb   :  { %1774 = vrcp.f32 %v837_v48 }
 0x3f1   :  { %v1775_v34 = vpop.eup %1774 }
 0x3f2   :  { %v897_v25 = vmul.f32 %v1775_v34, %v2212_v4  ;;  %v840_v26 = vpop.xlane.xlu0 %839 }
 0x3f3   :  { %1776 = vrcp.f32 %v840_v26 }
 0x3f4   :  { %v843_v28 = vpop.xlane.xlu2 %842  ;;  %1644 = vmatmul.msk.f32.vlgmr.msrb.gmra.mxu0 %vm735_vm10, %v897_v25 }
 0x3f5   :  { %1778 = vrcp.f32 %v843_v28 }
 0x3f9   :  { %v1777_v53 = vpop.eup %1776 }
 0x3fa   :  { %v898_v27 = vmul.f32 %v1777_v53, %v2216_v14 }
 0x3fb   :  { %v1779_v30 = vpop.eup %1778 }
 0x3fc   :  { %v899_v32 = vmul.f32 %v1779_v30, %v2221_v15  ;;  %v852_v36 = vpop.xlane.xlu0 %851  ;;  %1645 = vmatmul.msk.f32.vlgmr.msra.gmra.mxu1 %vm735_vm10, %v898_v27 }
 0x3fd   :  { %1780 = vrcp.f32 %v852_v36 }
 0x3fe   :  { %1646 = vmatmul.msk.f32.vlgmr.msra.gmra.mxu2 %vm735_vm10, %v899_v32 }
 0x3ff   :  { %1219 = vmatpush.msra.mxu2 %v1710_v21 }
 0x402   :  { %v1703_v22 = vpop.permute.xlu1 %1702 }
 0x403   :  { %v1781_v23 = vpop.eup %1780  ;;  %v1705_v4 = vunpack.i.h.bf16 %v1703_v22  ;;  %v1704_v7 = vunpack.i.l.bf16 %v1703_v22 }
 0x404   :  { %v902_v18 = vmul.f32 %v1781_v23, %v2226_v29  ;;  %v861_v60 = vpop.xlane.xlu0 %860 }
 0x405   :  { %1063 = vmatpush.msra.mxu0 %v1704_v7  ;;  %1089 = vmatpush.msrb.mxu1 %v1705_v4 }
 0x406   :  { %1649 = vmatmul.msk.f32.vlgmr.msrb.gmra.mxu1 %vm735_vm10, %v902_v18  ;;  %v1412_v18 = vld [vmem:[%s2448_s5 + $0x18] sm:$0xff] }
 0x40c   :  { %v846_v14 = vpop.xlane.xlu2 %845 }
 0x40d   :  { %1782 = vrcp.f32 %v846_v14  ;;  %v1411_v14 = vld [vmem:[%s2448_s5 + $0x10] sm:$0xff] }
 0x413   :  { %v1783_v15 = vpop.eup %1782 }
 0x414   :  { %v900_v54 = vmul.f32 %v1783_v15, %v2240_v52  ;;  %v849_v56 = vpop.xlane.xlu2 %848  ;;  %v1410_v15 = vld [vmem:[%s2448_s5 + $0x8] sm:$0xff] }
 0x415   :  { %1784 = vrcp.f32 %v849_v56 }
 0x416   :  { %1647 = vmatmul.msk.f32.vlgmr.msrb.gmra.mxu3 %vm735_vm10, %v900_v54 }
 0x41b   :  { %v1785_v57 = vpop.eup %1784 }
 0x41c   :  { %v901_v59 = vmul.f32 %v1785_v57, %v2245_v16  ;;  %v864_v45 = vpop.xlane.xlu2 %863  ;;  %v1409_v57 = vld [vmem:[%s2448_s5] sm:$0xff] }
 0x41e   :  { %1648 = vmatmul.msk.f32.vlgmr.msra.gmra.mxu0 %vm735_vm10, %v901_v59 }
 0x424   :  { %v873_v29 = vpop.xlane.xlu2 %872 }
 0x425   :  { %v935_v62 = vpop.f32.mrf.mxu3  ;;  %v855_v63 = vpop.xlane.xlu0 %854 }
 0x426   :  { %1328 = vst.msk [vmem:[#allocation3] sm:$0xff] %vm289_vm9, %v935_v62  ;;  %1786 = vrcp.f32 %v855_v63 }
 0x42c   :  { %v1787_v0 = vpop.eup %1786 }
 0x42d   :  { %v903_v52 = vmul.f32 %v1787_v0, %v2262_v39  ;;  %v858_v1 = vpop.xlane.xlu2 %857  ;;  %v867_v2 = vpop.xlane.xlu1 %866 }
 0x42e   :  { %1788 = vrcp.f32 %v858_v1 }
 0x42f   :  { %1790 = vrcp.f32 %v867_v2  ;;  %1650 = vmatmul.msk.f32.vlgmr.msrb.gmra.mxu2 %vm735_vm10, %v903_v52 }
 0x430   :  { %1792 = vrcp.f32 %v861_v60 }
 0x431   :  { %1794 = vrcp.f32 %v864_v45 }
 0x434   :  { %v1789_v16 = vpop.eup %1788 }
 0x435   :  { %v1791_v47 = vpop.eup %1790  ;;  %v904_v49 = vmul.f32 %v1789_v16, %v2271_v33  ;;  %v879_v3 = vpop.xlane.xlu2 %878  ;;  %v1729_v16 = vld [vmem:[%s2449_s6] ss:$0 sm:$0xff] }
 0x436   :  { %v870_v6 = vpop.xlane.xlu1 %869  ;;  %v1793_v8 = vpop.eup %1792  ;;  %v907_v9 = vmul.f32 %v1791_v47, %v2269_v50  ;;  %1796 = vrcp.f32 %v879_v3  ;;  %v1808_v3 = vld [vmem:[#allocation4] sm:$0xff] }
 0x437   :  { %v1795_v12 = vpop.eup %1794  ;;  %1798 = vrcp.f32 %v870_v6  ;;  %1651 = vmatmul.msk.f32.vlgmr.msra.gmra.mxu3 %vm735_vm10, %v904_v49  ;;  %v905_v13 = vmul.f32 %v1793_v8, %v2231_v41 }
 0x438   :  { %v1713_v39 = vpop.permute.xlu0 %1712  ;;  %1654 = vmatmul.msk.f32.vlgmr.msra.gmra.mxu2 %vm735_vm10, %v907_v9  ;;  %1800 = vrcp.f32 %v873_v29  ;;  %v906_v17 = vmul.f32 %v1795_v12, %v2252_v61 }
 0x439   :  { %v1715_v44 = vunpack.i.h.bf16 %v1713_v39  ;;  %v1714_v11 = vunpack.i.l.bf16 %v1713_v39  ;;  %v1809_v39 = vld [vmem:[#allocation4 + $0x8] sm:$0xff] }
 0x43b   :  { %1167 = vmatpush.msrb.mxu0 %v1714_v11  ;;  %1193 = vmatpush.msra.mxu1 %v1715_v44 }
 0x43c   :  { %v1797_v19 = vpop.eup %1796  ;;  %1652 = vmatmul.msk.f32.vlgmr.msrb.gmra.mxu0 %vm735_vm10, %v905_v13  ;;  %1653 = vmatmul.msk.f32.vlgmr.msra.gmra.mxu1 %vm735_vm10, %v906_v17 }
 0x43d   :  { %v1799_v20 = vpop.eup %1798  ;;  %v1718_v55 = vpop.permute.xlu2 %1717  ;;  %v911_v41 = vmul.f32 %v1797_v19, %v2278_v40 }
 0x43e   :  { %v876_v24 = vpop.xlane.xlu1 %875  ;;  %v908_v50 = vmul.f32 %v1799_v20, %v2280_v42  ;;  %v1720_v33 = vunpack.i.h.bf16 %v1718_v55  ;;  %v1719_v58 = vunpack.i.l.bf16 %v1718_v55  ;;  %v1801_v31 = vpop.eup %1800 }
 0x43f   :  { %1802 = vrcp.f32 %v876_v24  ;;  %v909_v43 = vmul.f32 %v1801_v31, %v2258_v5 }
 0x440   :  { %v1723_v37 = vpop.permute.xlu0 %1722  ;;  %1245 = vmatpush.msrb.mxu3 %v1719_v58  ;;  %1323 = vmatpush.msrb.mxu2 %v1720_v33 }
 0x441   :  { %v1725_v61 = vunpack.i.h.bf16 %v1723_v37  ;;  %v1724_v38 = vunpack.i.l.bf16 %v1723_v37  ;;  %1655 = vmatmul.msk.f32.vlgmr.msrb.gmra.mxu3 %vm735_vm10, %v908_v50  ;;  %1658 = vmatmul.msk.f32.vlgmr.msrb.gmra.mxu2 %vm735_vm10, %v911_v41  ;;  %v1507_v41 = vld [vmem:[%s2452_s9 + $0x18] sm:$0xff]  ;;  %v1506_v37 = vld [vmem:[%s2452_s9 + $0x10] sm:$0xff] }
 0x442   :  { %1435 = vmatpush.msra.mxu3 %v1412_v18  ;;  %v1546_v18 = vld [vmem:[%s2454_s11 + $0x18] sm:$0xff] }
 0x443   :  { %1271 = vmatpush.msra.mxu0 %v1724_v38  ;;  %1297 = vmatpush.msrb.mxu1 %v1725_v61  ;;  %v1505_v61 = vld [vmem:[%s2452_s9 + $0x8] sm:$0xff]  ;;  %v1504_v38 = vld [vmem:[%s2452_s9] sm:$0xff] }
 0x444   :  { %1656 = vmatmul.msk.f32.vlgmr.msra.gmra.mxu0 %vm735_vm10, %v909_v43  ;;  %1436 = vmatpush.msra.mxu3 %v1411_v14 }
 0x445   :  { %v1803_v42 = vpop.eup %1802  ;;  %1530 = vmatpush.msrb.mxu0 %v1507_v41 }
 0x446   :  { %v910_v51 = vmul.f32 %v1803_v42, %v2286_v35  ;;  %1437 = vmatpush.msra.mxu3 %v1410_v15 }
 0x447   :  { %1531 = vmatpush.msrb.mxu0 %v1506_v37 }
 0x448   :  { %1657 = vmatmul.msk.f32.vlgmr.msrb.gmra.mxu1 %vm735_vm10, %v910_v51  ;;  %1438 = vmatpush.msra.mxu3 %v1409_v57 }
 0x449   :  { %1532 = vmatpush.msrb.mxu0 %v1505_v61 }
 0x44b   :  { %1533 = vmatpush.msrb.mxu0 %v1504_v38 }
 0x471   :  { %v961_v40 = vpop.f32.mrf.mxu0 }
 0x472   :  { %1330 = vrot.lane.b32.xlu0 %v961_v40, %s1902_s1 }
 0x479   :  { %v987_v46 = vpop.f32.mrf.mxu1 }
 0x47a   :  { %1336 = vrot.lane.b32.xlu0 %v987_v46, %s1890_s17 }
 0x481   :  { %v1013_v48 = vpop.f32.mrf.mxu2 }
 0x482   :  { %1342 = vrot.lane.b32.xlu2 %v1013_v48, %s1903_s20 }
 0x483   :  { %v1091_v34 = vpop.f32.mrf.mxu1 }
 0x484   :  { %1360 = vrot.lane.b32.xlu0 %v1091_v34, %s1904_s21 }
 0x499   :  { %v1039_v5 = vpop.f32.mrf.mxu3 }
 0x49a   :  { %1348 = vrot.lane.b32.xlu0 %v1039_v5, %s1905_s22 }
 0x49b   :  { %v1065_v25 = vpop.f32.mrf.mxu0 }
 0x49c   :  { %1354 = vrot.lane.b32.xlu2 %v1065_v25, %s1906_s23 }
 0x4b2   :  { %v1117_v35 = vpop.f32.mrf.mxu2 }
 0x4b3   :  { %1366 = vrot.lane.b32.xlu1 %v1117_v35, %s1907_s24  ;;  %v1730_v35 = vld [vmem:[%s2450_s7] ss:$0 sm:$0xff] }
 0x4b9   :  { %v1169_v26 = vpop.f32.mrf.mxu0  ;;  %v1195_v28 = vpop.f32.mrf.mxu1 }
 0x4ba   :  { %v1143_v53 = vpop.f32.mrf.mxu3  ;;  %1378 = vrot.lane.b32.xlu0 %v1195_v28, %s1890_s17  ;;  %1373 = vrot.lane.b32.xlu2 %v1169_v26, %s1902_s1 }
 0x4bb   :  { %1371 = vst.msk [vmem:[#allocation3 + $0x8] sm:$0xff] %vm289_vm9, %v1143_v53  ;;  %v1221_v27 = vpop.f32.mrf.mxu2  ;;  %v1731_v53 = vld [vmem:[%s2451_s8] ss:$0 sm:$0xff]  ;;  %vm1555_vm9 = vcmask 523264  }
 0x4c1   :  { %v1273_v36 = vpop.f32.mrf.mxu0 }
 0x4c2   :  { %1383 = vrot.lane.b32.xlu2 %v1221_v27, %s1903_s20  ;;  %v1550_v27 = vld [vmem:[%s2454_s11 + $0x38] sm:$0xff] }
 0x4c3   :  { %1570 = vmatpush.msra.mxu1 %v1550_v27 }
 0x4c4   :  { %v1247_v30 = vpop.f32.mrf.mxu3  ;;  %v1325_v32 = vpop.f32.mrf.mxu2 }
 0x4c5   :  { %1403 = vrot.lane.b32.xlu1 %v1325_v32, %s1907_s24  ;;  %1388 = vrot.lane.b32.xlu0 %v1247_v30, %s1905_s22  ;;  %v1299_v21 = vpop.f32.mrf.mxu1  ;;  %v1549_v30 = vld [vmem:[%s2454_s11 + $0x30] sm:$0xff]  ;;  %s1595_s22 = sshll.u32 %s2456_s13, 4  ;;  %s1596_s22 = int_to_ptr.hbm [resolvable:$true] %s1595_s22 }
 0x4c6   :  { %1571 = vmatpush.msra.mxu1 %v1549_v30 }
 0x4ca   :  { %1393 = vrot.lane.b32.xlu2 %v1273_v36, %s1906_s23  ;;  %v1548_v36 = vld [vmem:[%s2454_s11 + $0x28] sm:$0xff] }
 0x4cb   :  { %1572 = vmatpush.msra.mxu1 %v1548_v36 }
 0x4cd   :  { %1398 = vrot.lane.b32.xlu0 %v1299_v21, %s1904_s21 }
 0x4dc   :  { %v1343_v4 = vpop.permute.xlu2 %1342 }
 0x4e4   :  { %v1331_v22 = vpop.permute.xlu0 %1330 }
 0x4e5   :  { %1334 = vst.msk [vmem:[#allocation3] sm:$0xff] %vm1333_vm11, %v1331_v22 }
 0x4ec   :  { %v1337_v23 = vpop.permute.xlu0 %1336 }
 0x4ed   :  { %1340 = vst.msk [vmem:[#allocation3] sm:$0xff] %vm1339_vm12, %v1337_v23 }
 0x4ee   :  { %1346 = vst.msk [vmem:[#allocation3] sm:$0xff] %vm1345_vm13, %v1343_v4  ;;  %v1547_v4 = vld [vmem:[%s2454_s11 + $0x20] sm:$0xff] }
 0x4ef   :  { %1573 = vmatpush.msra.mxu1 %v1547_v4 }
 0x4f1   :  { %1574 = vmatpush.msra.mxu1 %v1546_v18 }
 0x4f6   :  { %v1361_v7 = vpop.permute.xlu0 %1360  ;;  %v1355_v54 = vpop.permute.xlu2 %1354 }
 0x50c   :  { %v1349_v56 = vpop.permute.xlu0 %1348 }
 0x50d   :  { %1352 = vst.msk [vmem:[#allocation3] sm:$0xff] %vm1351_vm14, %v1349_v56 }
 0x50e   :  { %1358 = vst.msk [vmem:[#allocation3] sm:$0xff] %vm1357_vm15, %v1355_v54 }
 0x50f   :  { %1364 = vst.msk [vmem:[#allocation3] sm:$0xff] %vm1363_vm1, %v1361_v7 }
 0x514   :  { %v1374_v59 = vpop.permute.xlu2 %1373 }
 0x515   :  { %1376 = vst.msk [vmem:[#allocation3 + $0x8] sm:$0xff] %vm1333_vm11, %v1374_v59 }
 0x51c   :  { %v1384_v29 = vpop.permute.xlu2 %1383 }
 0x524   :  { %v1394_v0 = vpop.permute.xlu2 %1393 }
 0x525   :  { %v1367_v45 = vpop.permute.xlu1 %1366 }
 0x526   :  { %1370 = vst.msk [vmem:[#allocation3] sm:$0xff] %vm1369_vm2, %v1367_v45 }
 0x52c   :  { %v1379_v60 = vpop.permute.xlu0 %1378 }
 0x52d   :  { %1381 = vst.msk [vmem:[#allocation3 + $0x8] sm:$0xff] %vm1339_vm12, %v1379_v60  ;;  %v1407_v62 = vld [vmem:[#allocation3] sm:$0xff] }
 0x52e   :  { %1386 = vst.msk [vmem:[#allocation3 + $0x8] sm:$0xff] %vm1345_vm13, %v1384_v29  ;;  %1659 = vmatmul.msk.f32.vlgmr.msra.gmra.mxu3 %vm79_vm0, %v1407_v62  ;;  %v1545_v62 = vld [vmem:[%s2454_s11 + $0x10] sm:$0xff] }
 0x52f   :  { %1575 = vmatpush.msra.mxu1 %v1545_v62 }
 0x537   :  { %v1389_v63 = vpop.permute.xlu0 %1388  ;;  %v1404_v1 = vpop.permute.xlu1 %1403 }
 0x538   :  { %1391 = vst.msk [vmem:[#allocation3 + $0x8] sm:$0xff] %vm1351_vm14, %v1389_v63  ;;  %v1544_v63 = vld [vmem:[%s2454_s11 + $0x8] sm:$0xff] }
 0x539   :  { %1396 = vst.msk [vmem:[#allocation3 + $0x8] sm:$0xff] %vm1357_vm15, %v1394_v0  ;;  %v1543_v0 = vld [vmem:[%s2454_s11] sm:$0xff]  ;;  %1576 = vmatpush.msra.mxu1 %v1544_v63 }
 0x53b   :  { %1577 = vmatpush.msra.mxu1 %v1543_v0 }
 0x53f   :  { %v1399_v52 = vpop.permute.xlu0 %1398 }
 0x540   :  { %1401 = vst.msk [vmem:[#allocation3 + $0x8] sm:$0xff] %vm1363_vm1, %v1399_v52  ;;  %v1732_v52 = vld [vmem:[%s2453_s10] ss:$0 sm:$0xff]  ;;  %s1908_s10 = smov [#allocation9]  }
 0x541   :  { %1406 = vst.msk [vmem:[#allocation3 + $0x8] sm:$0xff] %vm1369_vm2, %v1404_v1  ;;  %s1593_s11 = sshll.u32 %s1908_s10, 4  ;;  %s1594_s11 = int_to_ptr.vmem [resolvable:$true] %s1593_s11 }
 0x548   :  { %v1408_v2 = vld [vmem:[#allocation3 + $0x8] sm:$0xff] }
 0x549   :  { %1660 = vmatmul.msk.f32.gmra.mxu3 %vm79_vm0, %v1408_v2 }
 0x5b1   :  { %v1440_v47 = vpop.f32.mrf.mxu3 }
 0x5b2   :  { %v1441_v49 = vadd.f32 %v1729_v16, %v1440_v47 }
 0x5b4   :  { %v2367_v6 = vadd.f32 %v1808_v3, %v1441_v49 }
 0x5b6   :  { %v1450_v8 = vsel %vm79_vm0, %v2367_v6, 0.0 }
 0x5b7   :  { %1451 = vadd.xlane.f32.xlu2 %v1450_v8  ;;  %v1733_v8 = vld [vmem:[%s2455_s12] ss:$0 sm:$0xff] }
 0x5cc   :  { %v1443_v9 = vpop.f32.mrf.mxu3 }
 0x5cd   :  { %v1444_v12 = vadd.f32 %v1729_v16, %v1443_v9 }
 0x5cf   :  { %v2371_v44 = vadd.f32 %v1809_v39, %v1444_v12 }
 0x5d1   :  { %v1453_v11 = vsel %vm79_vm0, %v2371_v44, 0.0 }
 0x5d2   :  { %1454 = vadd.xlane.f32.xlu0 %v1453_v11 }
 0x62a   :  { %v1452_v13 = vpop.xlane.xlu2 %1451 }
 0x62b   :  { %v1456_v17 = vmul.f32 %v1452_v13, %v1990_v10 }
 0x62d   :  { %v1458_v19 = vsub.f32 %v2367_v6, %v1456_v17 }
 0x62f   :  { %v1460_v20 = vmul.f32 %v1458_v19, %v1458_v19 }
 0x631   :  { %v1462_v55 = vsel %vm79_vm0, %v1460_v20, 0.0 }
 0x632   :  { %1463 = vadd.xlane.f32.xlu1 %v1462_v55 }
 0x645   :  { %v1455_v24 = vpop.xlane.xlu0 %1454 }
 0x646   :  { %v1457_v50 = vmul.f32 %v1455_v24, %v1990_v10 }
 0x648   :  { %v1459_v33 = vsub.f32 %v2371_v44, %v1457_v50 }
 0x64a   :  { %v1461_v58 = vmul.f32 %v1459_v33, %v1459_v33 }
 0x64c   :  { %v1465_v31 = vsel %vm79_vm0, %v1461_v58, 0.0 }
 0x64d   :  { %1466 = vadd.xlane.f32.xlu2 %v1465_v31 }
 0x6a5   :  { %v1464_v43 = vpop.xlane.xlu1 %1463 }
 0x6a6   :  { %v1468_v42 = vmul.f32 %v1464_v43, %v1990_v10 }
 0x6a8   :  { %v1470_v51 = vadd.f32 1e-05, %v1468_v42 }
 0x6aa   :  { %1804 = vrsqrt.f32 %v1470_v51  ;;  %vm1478_vm4 = vweird.f32 %v1470_v51 }
 0x6b0   :  { %v1805_v40 = vpop.eup %1804 }
 0x6b1   :  { %v1473_v46 = vmul.f32 %v1805_v40, %v1470_v51  ;;  %vm1479_vm3 = vweird.f32 %v1805_v40 }
 0x6b2   :  { %vm1480_vm5 = vmor %vm1478_vm4, %vm1479_vm3 }
 0x6b3   :  { %v1474_v48 = vmul.f32 %v1805_v40, %v1473_v46 }
 0x6b5   :  { %v1475_v34 = vmul.f32 0.5, %v1474_v48 }
 0x6b7   :  { %v1476_v5 = vsub.f32 1.5, %v1475_v34 }
 0x6b9   :  { %v1477_v25 = vmul.f32 %v1805_v40, %v1476_v5 }
 0x6bb   :  { %v1481_v26 = vsel %vm1480_vm5, %v1805_v40, %v1477_v25 }
 0x6bc   :  { %v1492_v28 = vmul.f32 %v1481_v26, %v1458_v19 }
 0x6be   :  { %v1497_v32 = vmul.f32 %v1730_v35, %v1492_v28 }
 0x6c0   :  { %v1467_v21 = vpop.xlane.xlu2 %1466  ;;  %v1502_v22 = vadd.f32 %v1731_v53, %v1497_v32 }
 0x6c1   :  { %v1469_v23 = vmul.f32 %v1467_v21, %v1990_v10 }
 0x6c2   :  { %1661 = vmatmul.msk.f32.vlgmr.msrb.gmra.mxu0 %vm79_vm0, %v1502_v22 }
 0x6c3   :  { %v1471_v7 = vadd.f32 1e-05, %v1469_v23 }
 0x6c5   :  { %1806 = vrsqrt.f32 %v1471_v7  ;;  %vm1488_vm7 = vweird.f32 %v1471_v7 }
 0x6cb   :  { %v1807_v14 = vpop.eup %1806 }
 0x6cc   :  { %v1483_v15 = vmul.f32 %v1807_v14, %v1471_v7  ;;  %vm1489_vm6 = vweird.f32 %v1807_v14 }
 0x6cd   :  { %vm1490_vm8 = vmor %vm1488_vm7, %vm1489_vm6 }
 0x6ce   :  { %v1484_v54 = vmul.f32 %v1807_v14, %v1483_v15 }
 0x6d0   :  { %v1485_v56 = vmul.f32 0.5, %v1484_v54 }
 0x6d2   :  { %v1486_v10 = vsub.f32 1.5, %v1485_v56 }
 0x6d4   :  { %v1487_v57 = vmul.f32 %v1807_v14, %v1486_v10 }
 0x6d6   :  { %v1491_v59 = vsel %vm1490_vm8, %v1807_v14, %v1487_v57 }
 0x6d7   :  { %v1493_v45 = vmul.f32 %v1491_v59, %v1459_v33 }
 0x6d9   :  { %v1498_v60 = vmul.f32 %v1730_v35, %v1493_v45 }
 0x6db   :  { %v1503_v29 = vadd.f32 %v1731_v53, %v1498_v60 }
 0x6dd   :  { %1662 = vmatmul.msk.f32.gmra.mxu0 %vm79_vm0, %v1503_v29 }
 0x73f   :  { %v1535_v1 = vpop.f32.mrf.mxu0 }
 0x740   :  { %v1536_v2 = vadd.f32 %v1732_v52, %v1535_v1 }
 0x742   :  { %v1541_v16 = vmax.f32 %v1536_v2, 0.0 }
 0x744   :  { %1663 = vmatmul.msk.f32.vlgmr.msra.gmra.mxu1 %vm1555_vm9, %v1541_v16 }
 0x75a   :  { %v1538_v47 = vpop.f32.mrf.mxu0 }
 0x75b   :  { %v1539_v49 = vadd.f32 %v1732_v52, %v1538_v47 }
 0x75d   :  { %v1542_v3 = vmax.f32 %v1539_v49, 0.0 }
 0x75f   :  { %1664 = vmatmul.msk.f32.gmra.mxu1 %vm1555_vm9, %v1542_v3 }
 0x7c1   :  { %v1579_v9 = vpop.f32.mrf.mxu1 }
 0x7c2   :  { %v1580_v12 = vadd.f32 %v1733_v8, %v1579_v9 }
 0x7c4   :  { %v1585_v39 = vadd.f32 %v1580_v12, %v2367_v6 }
 0x7c6   :  { %1587 = vst.msk [vmem:[#allocation9] sm:$0xff] %vm79_vm0, %v1585_v39 }
 0x7dc   :  { %v1582_v11 = vpop.f32.mrf.mxu1 }
 0x7dd   :  { %v1583_v13 = vadd.f32 %v1733_v8, %v1582_v11 }
 0x7df   :  { %v1586_v17 = vadd.f32 %v1583_v13, %v2371_v44 }
 0x7e1   :  { %1588 = vst.msk [vmem:[#allocation9 + $0x8] sm:$0xff] %vm79_vm0, %v1586_v17 }
 0x7e2   :  { %1601 = dma.vmem_to_hbm [thread:$0]  %s1594_s11, 256, %s1596_s22, [#allocation6], %s1889_s16, %s1889_s16, %s1890_s17  }
 0x7e3   :  { %1886 = dma.done.wait [#allocation6], 256  }
 0x7e4   :  { %1887 = vsyncadd [#allocation6], 4294967040 }
 0x7e5   :  { %1606 = vsyncpa [#allocation5], 1 }
 0x7e6   :  { %1607 = vsyncpa [#allocation8], 1 }
 0x7e7   :  { %1608 = vsyncpa [#allocation6], 1 }

</bundles_post_ra>
